<compile_context>
chip_gen: v6e
topology: v6e:2x2x1
jax: 0.10.0
libtpu: 0.0.40
codegen_flags: <defaults>
</compile_context>

<pallas_src>
import functools

import jax
import jax.numpy as jnp
import numpy as np
from jax.experimental import pallas as pl
from jax.experimental.pallas import tpu as pltpu


def make_lstm_kernel(seq, bsz, cdim):
    """Builds the single-invocation LSTM kernel for static (seq, bsz, cdim)."""
    three_c = 3 * cdim

    def kernel(x_ref, wih_ref, whh_ref, b_ref, h0_ref, c0_ref, out_ref):
        # x_ref   : (seq*bsz, idim)   time-flattened inputs
        # wih_ref : (idim, 4*cdim)    W_ih^T, columns permuted to [i|f|o|g]
        # whh_ref : (cdim, 4*cdim)    W_hh^T, columns permuted to [i|f|o|g]
        # b_ref   : (1, 4*cdim)       b_ih + b_hh, permuted to [i|f|o|g]
        # h0_ref  : (1, cdim)
        # c0_ref  : (1, cdim)
        # out_ref : (seq*bsz, cdim)   time-flattened hidden states

        # Phase 1: hoisted input projection — one MXU matmul over ALL timesteps,
        # off the recurrent critical path.
        xproj = (
            jnp.dot(
                x_ref[...],
                wih_ref[...],
                preferred_element_type=jnp.float32,
                precision=jax.lax.Precision.HIGHEST,
            )
            + b_ref[...]
        )  # (seq*bsz, 4*cdim)

        whh = whh_ref[...]  # loaded once, reused every step
        h = jnp.broadcast_to(h0_ref[...], (bsz, cdim))
        c = jnp.broadcast_to(c0_ref[...], (bsz, cdim))

        # Lane-id mask hoisted out of the recurrence: with 4*cdim lanes in one
        # (or a few) vreg(s), sigmoid covers lanes [0, 3c) and tanh [3c, 4c).
        lane = jax.lax.broadcasted_iota(jnp.int32, (bsz, 4 * cdim), 1)
        sig_mask = lane < three_c

        # Phase 2: serial recurrence, fully unrolled (seq is small & static).
        # One small matmul (h @ W_hh^T) per step on the dependent chain.
        hs = []
        for t in range(seq):
            gates = xproj[t * bsz:(t + 1) * bsz, :] + jnp.dot(
                h,
                whh,
                preferred_element_type=jnp.float32,
                precision=jax.lax.Precision.HIGHEST,
            )  # (bsz, 4*cdim)

            # Full-width nonlinearity with a single select (no per-slice
            # activate-then-relayout on the serial path).
            act = jnp.where(sig_mask, jax.nn.sigmoid(gates), jnp.tanh(gates))

            i = act[:, 0 * cdim:1 * cdim]
            f = act[:, 1 * cdim:2 * cdim]
            o = act[:, 2 * cdim:3 * cdim]
            g = act[:, 3 * cdim:4 * cdim]

            c = f * c + i * g
            h = o * jnp.tanh(c)
            hs.append(h)

        # Single lane/sublane-dense store of all timesteps at once.
        out_ref[...] = jnp.concatenate(hs, axis=0).astype(out_ref.dtype)

    return kernel


def _permute_gates_ifog(w_cols):
    """Columns arrive as PyTorch [i|f|g|o]; reorder to [i|f|o|g]."""
    i, f, g, o = jnp.split(w_cols, 4, axis=-1)
    return jnp.concatenate([i, f, o, g], axis=-1)


def prepare_lstm_params(w_ih, w_hh, b_ih, b_hh, h0, c0):
    """One-time (model-load) parameter prep; keeps XLA transposes/concats off
    the per-call forward path."""
    cdim = h0.shape[0]
    wih_t = _permute_gates_ifog(jnp.asarray(w_ih, jnp.float32).T)   # (idim, 4c)
    whh_t = _permute_gates_ifog(jnp.asarray(w_hh, jnp.float32).T)   # (cdim, 4c)
    b = _permute_gates_ifog(
        (jnp.asarray(b_ih, jnp.float32)
         + jnp.asarray(b_hh, jnp.float32)).reshape(1, 4 * cdim))
    h0_2d = jnp.asarray(h0, jnp.float32).reshape(1, cdim)
    c0_2d = jnp.asarray(c0, jnp.float32).reshape(1, cdim)
    return wih_t, whh_t, b, h0_2d, c0_2d


@jax.jit
def encoder_lstm_forward(embs, wih_t, whh_t, b, h0_2d, c0_2d):
    """embs: (seq, B, idim). Returns (seq, B, cdim)."""
    seq, bsz, idim = embs.shape
    cdim = h0_2d.shape[1]

    x_flat = embs.astype(jnp.float32).reshape(seq * bsz, idim)

    grid_spec = pltpu.PrefetchScalarGridSpec(
        num_scalar_prefetch=0,
        grid=(1,),  # single invocation: whole problem resident in VMEM
        in_specs=[
            pl.BlockSpec((seq * bsz, idim), lambda n: (0, 0)),    # X (flattened)
            pl.BlockSpec((idim, 4 * cdim), lambda n: (0, 0)),     # W_ih^T
            pl.BlockSpec((cdim, 4 * cdim), lambda n: (0, 0)),     # W_hh^T
            pl.BlockSpec((1, 4 * cdim), lambda n: (0, 0)),        # bias
            pl.BlockSpec((1, cdim), lambda n: (0, 0)),            # h0
            pl.BlockSpec((1, cdim), lambda n: (0, 0)),            # c0
        ],
        # 2-D, lane-dense output block: one store in-kernel, one DMA out.
        out_specs=pl.BlockSpec((seq * bsz, cdim), lambda n: (0, 0)),
        scratch_shapes=[],
    )

    out2d = pl.pallas_call(
        make_lstm_kernel(seq, bsz, cdim),
        out_shape=jax.ShapeDtypeStruct((seq * bsz, cdim), jnp.float32),
        grid_spec=grid_spec,
        compiler_params=pltpu.CompilerParams(
            dimension_semantics=("arbitrary",)),
    )(x_flat, wih_t, whh_t, b, h0_2d, c0_2d)

    return out2d.reshape(seq, bsz, cdim)


def reference_lstm(embs, w_ih, w_hh, b_ih, b_hh, h0, c0):
    """Pure-JAX reference reproducing the PyTorch forward (gate order [i,f,g,o])."""
    seq, bsz, _ = embs.shape
    cdim = h0.shape[0]
    h = jnp.broadcast_to(h0[None, :], (bsz, cdim))
    c = jnp.broadcast_to(c0[None, :], (bsz, cdim))
    outs = []
    for t in range(seq):
        x = embs[t]
        gates = x @ w_ih.T + h @ w_hh.T + b_ih + b_hh
        i, f, g, o = jnp.split(gates, 4, axis=-1)
        i = jax.nn.sigmoid(i)
        f = jax.nn.sigmoid(f)
        g = jnp.tanh(g)
        o = jax.nn.sigmoid(o)
        c = f * c + i * g
        h = o * jnp.tanh(c)
        outs.append(h)
    return jnp.stack(outs, axis=0)


if __name__ == "__main__":
    # Small shapes consistent with the module: seq=8, batch=2, idim=16, hdim(cdim)=32
    seq, bsz, idim, cdim = 8, 2, 16, 32

    key = jax.random.PRNGKey(0)
    k_emb, k_wih, k_whh, k_h0, k_c0 = jax.random.split(key, 5)

    # _reset_controller: weights ~ U(-stdev, stdev), stdev = 5/sqrt(idim+cdim); biases = 0
    stdev = 5.0 / np.sqrt(idim + cdim)
    w_ih = jax.random.uniform(k_wih, (4 * cdim, idim), jnp.float32, -stdev, stdev)
    w_hh = jax.random.uniform(k_whh, (4 * cdim, cdim), jnp.float32, -stdev, stdev)
    b_ih = jnp.zeros((4 * cdim,), jnp.float32)
    b_hh = jnp.zeros((4 * cdim,), jnp.float32)

    # h0, c0 = randn(cdim) * 0.05
    h0 = jax.random.normal(k_h0, (cdim,), jnp.float32) * 0.05
    c0 = jax.random.normal(k_c0, (cdim,), jnp.float32) * 0.05

    # embs: (seq, batch, idim)  (Dropout(0) is identity, so omitted)
    embs = jax.random.normal(k_emb, (seq, bsz, idim), jnp.float32)

    # One-time parameter prep (hoisted off the per-call forward path).
    params = jax.block_until_ready(
        prepare_lstm_params(w_ih, w_hh, b_ih, b_hh, h0, c0))

    out = encoder_lstm_forward(embs, *params)
    out = jax.block_until_ready(out)

    ref = reference_lstm(embs, w_ih, w_hh, b_ih, b_hh, h0, c0)
    np.testing.assert_allclose(np.asarray(out), np.asarray(ref), rtol=1e-5, atol=1e-5)

    print("KERNEL_OK")
</pallas_src>

<mosaic_0001>
module attributes {stable_mosaic.version = 11 : i64} {
  func.func @kernel(%arg0: i32, %arg1: memref<16x16xf32, #tpu.memory_space<vmem>>, %arg2: memref<16x128xf32, #tpu.memory_space<vmem>>, %arg3: memref<32x128xf32, #tpu.memory_space<vmem>>, %arg4: memref<1x128xf32, #tpu.memory_space<vmem>>, %arg5: memref<1x32xf32, #tpu.memory_space<vmem>>, %arg6: memref<1x32xf32, #tpu.memory_space<vmem>>, %arg7: memref<16x32xf32, #tpu.memory_space<vmem>>) attributes {dimension_semantics = [#tpu.dimension_semantics<arbitrary>], iteration_bounds = array<i64: 1>, scalar_prefetch = 0 : i64, scratch_operands = 0 : i64, tpu.core_type = #tpu.core_type<tc>, window_params = [{pipeline_mode = #tpu.pipeline_mode<synchronous>, transform_indices = @transform_0, window_bounds = array<i64: 16, 16>}, {pipeline_mode = #tpu.pipeline_mode<synchronous>, transform_indices = @transform_1, window_bounds = array<i64: 16, 128>}, {pipeline_mode = #tpu.pipeline_mode<synchronous>, transform_indices = @transform_2, window_bounds = array<i64: 32, 128>}, {pipeline_mode = #tpu.pipeline_mode<synchronous>, transform_indices = @transform_3, window_bounds = array<i64: 1, 128>}, {pipeline_mode = #tpu.pipeline_mode<synchronous>, transform_indices = @transform_4, window_bounds = array<i64: 1, 32>}, {pipeline_mode = #tpu.pipeline_mode<synchronous>, transform_indices = @transform_5, window_bounds = array<i64: 1, 32>}, {pipeline_mode = #tpu.pipeline_mode<synchronous>, transform_indices = @transform_6, window_bounds = array<i64: 16, 32>}]} {
    %c0 = arith.constant 0 : index
    %c0_0 = arith.constant 0 : index
    %0 = vector.load %arg1[%c0, %c0_0] : memref<16x16xf32, #tpu.memory_space<vmem>>, vector<16x16xf32>
    %c0_1 = arith.constant 0 : index
    %c0_2 = arith.constant 0 : index
    %1 = vector.load %arg2[%c0_1, %c0_2] : memref<16x128xf32, #tpu.memory_space<vmem>>, vector<16x128xf32>
    %cst = arith.constant dense<0.000000e+00> : vector<16x128xf32>
    %2 = tpu.matmul %0, %1, %cst {dimension_numbers = #tpu.dot_dimension_numbers<[1], [0], [0], [1], [0, 0, 1, 1], [], []>, precision = #tpu.contract_precision<fp32>} : vector<16x16xf32>, vector<16x128xf32>, vector<16x128xf32> -> vector<16x128xf32>
    %c0_3 = arith.constant 0 : index
    %c0_4 = arith.constant 0 : index
    %3 = vector.load %arg4[%c0_3, %c0_4] : memref<1x128xf32, #tpu.memory_space<vmem>>, vector<1x128xf32>
    %4 = vector.broadcast %3 : vector<1x128xf32> to vector<16x128xf32>
    %5 = arith.addf %2, %4 : vector<16x128xf32>
    %c0_5 = arith.constant 0 : index
    %c0_6 = arith.constant 0 : index
    %6 = vector.load %arg3[%c0_5, %c0_6] : memref<32x128xf32, #tpu.memory_space<vmem>>, vector<32x128xf32>
    %c0_7 = arith.constant 0 : index
    %c0_8 = arith.constant 0 : index
    %7 = vector.load %arg5[%c0_7, %c0_8] : memref<1x32xf32, #tpu.memory_space<vmem>>, vector<1x32xf32>
    %8 = vector.shape_cast %7 : vector<1x32xf32> to vector<1x32xf32>
    %9 = vector.broadcast %8 : vector<1x32xf32> to vector<2x32xf32>
    %c0_9 = arith.constant 0 : index
    %c0_10 = arith.constant 0 : index
    %10 = vector.load %arg6[%c0_9, %c0_10] : memref<1x32xf32, #tpu.memory_space<vmem>>, vector<1x32xf32>
    %11 = vector.shape_cast %10 : vector<1x32xf32> to vector<1x32xf32>
    %12 = vector.broadcast %11 : vector<1x32xf32> to vector<2x32xf32>
    %13 = tpu.iota {dimensions = array<i32: 1>} : vector<2x128xi32>
    %c96_i32 = arith.constant 96 : i32
    %14 = vector.broadcast %c96_i32 : i32 to vector<2x128xi32>
    %15 = arith.cmpi slt, %13, %14 : vector<2x128xi32>
    %16 = vector.extract_strided_slice %5 {offsets = [0, 0], sizes = [2, 128], strides = [1, 1]} : vector<16x128xf32> to vector<2x128xf32>
    %cst_11 = arith.constant dense<0.000000e+00> : vector<2x128xf32>
    %17 = tpu.matmul %9, %6, %cst_11 {dimension_numbers = #tpu.dot_dimension_numbers<[1], [0], [0], [1], [0, 0, 1, 1], [], []>, precision = #tpu.contract_precision<fp32>} : vector<2x32xf32>, vector<32x128xf32>, vector<2x128xf32> -> vector<2x128xf32>
    %18 = arith.addf %16, %17 : vector<2x128xf32>
    %19 = arith.negf %18 : vector<2x128xf32>
    %20 = math.exp %19 : vector<2x128xf32>
    %cst_12 = arith.constant 1.000000e+00 : f32
    %21 = vector.broadcast %cst_12 : f32 to vector<2x128xf32>
    %22 = arith.addf %21, %20 : vector<2x128xf32>
    %23 = arith.divf %21, %22 : vector<2x128xf32>
    %24 = math.tanh %18 : vector<2x128xf32>
    %25 = arith.select %15, %23, %24 : vector<2x128xi1>, vector<2x128xf32>
    %26 = vector.extract_strided_slice %25 {offsets = [0, 0], sizes = [2, 32], strides = [1, 1]} : vector<2x128xf32> to vector<2x32xf32>
    %27 = vector.extract_strided_slice %25 {offsets = [0, 32], sizes = [2, 32], strides = [1, 1]} : vector<2x128xf32> to vector<2x32xf32>
    %28 = vector.extract_strided_slice %25 {offsets = [0, 64], sizes = [2, 32], strides = [1, 1]} : vector<2x128xf32> to vector<2x32xf32>
    %29 = vector.extract_strided_slice %25 {offsets = [0, 96], sizes = [2, 32], strides = [1, 1]} : vector<2x128xf32> to vector<2x32xf32>
    %30 = arith.mulf %27, %12 : vector<2x32xf32>
    %31 = arith.mulf %26, %29 : vector<2x32xf32>
    %32 = arith.addf %30, %31 : vector<2x32xf32>
    %33 = math.tanh %32 : vector<2x32xf32>
    %34 = arith.mulf %28, %33 : vector<2x32xf32>
    %35 = vector.extract_strided_slice %5 {offsets = [2, 0], sizes = [2, 128], strides = [1, 1]} : vector<16x128xf32> to vector<2x128xf32>
    %cst_13 = arith.constant dense<0.000000e+00> : vector<2x128xf32>
    %36 = tpu.matmul %34, %6, %cst_13 {dimension_numbers = #tpu.dot_dimension_numbers<[1], [0], [0], [1], [0, 0, 1, 1], [], []>, precision = #tpu.contract_precision<fp32>} : vector<2x32xf32>, vector<32x128xf32>, vector<2x128xf32> -> vector<2x128xf32>
    %37 = arith.addf %35, %36 : vector<2x128xf32>
    %38 = arith.negf %37 : vector<2x128xf32>
    %39 = math.exp %38 : vector<2x128xf32>
    %cst_14 = arith.constant 1.000000e+00 : f32
    %40 = vector.broadcast %cst_14 : f32 to vector<2x128xf32>
    %41 = arith.addf %40, %39 : vector<2x128xf32>
    %42 = arith.divf %40, %41 : vector<2x128xf32>
    %43 = math.tanh %37 : vector<2x128xf32>
    %44 = arith.select %15, %42, %43 : vector<2x128xi1>, vector<2x128xf32>
    %45 = vector.extract_strided_slice %44 {offsets = [0, 0], sizes = [2, 32], strides = [1, 1]} : vector<2x128xf32> to vector<2x32xf32>
    %46 = vector.extract_strided_slice %44 {offsets = [0, 32], sizes = [2, 32], strides = [1, 1]} : vector<2x128xf32> to vector<2x32xf32>
    %47 = vector.extract_strided_slice %44 {offsets = [0, 64], sizes = [2, 32], strides = [1, 1]} : vector<2x128xf32> to vector<2x32xf32>
    %48 = vector.extract_strided_slice %44 {offsets = [0, 96], sizes = [2, 32], strides = [1, 1]} : vector<2x128xf32> to vector<2x32xf32>
    %49 = arith.mulf %46, %32 : vector<2x32xf32>
    %50 = arith.mulf %45, %48 : vector<2x32xf32>
    %51 = arith.addf %49, %50 : vector<2x32xf32>
    %52 = math.tanh %51 : vector<2x32xf32>
    %53 = arith.mulf %47, %52 : vector<2x32xf32>
    %54 = vector.extract_strided_slice %5 {offsets = [4, 0], sizes = [2, 128], strides = [1, 1]} : vector<16x128xf32> to vector<2x128xf32>
    %cst_15 = arith.constant dense<0.000000e+00> : vector<2x128xf32>
    %55 = tpu.matmul %53, %6, %cst_15 {dimension_numbers = #tpu.dot_dimension_numbers<[1], [0], [0], [1], [0, 0, 1, 1], [], []>, precision = #tpu.contract_precision<fp32>} : vector<2x32xf32>, vector<32x128xf32>, vector<2x128xf32> -> vector<2x128xf32>
    %56 = arith.addf %54, %55 : vector<2x128xf32>
    %57 = arith.negf %56 : vector<2x128xf32>
    %58 = math.exp %57 : vector<2x128xf32>
    %cst_16 = arith.constant 1.000000e+00 : f32
    %59 = vector.broadcast %cst_16 : f32 to vector<2x128xf32>
    %60 = arith.addf %59, %58 : vector<2x128xf32>
    %61 = arith.divf %59, %60 : vector<2x128xf32>
    %62 = math.tanh %56 : vector<2x128xf32>
    %63 = arith.select %15, %61, %62 : vector<2x128xi1>, vector<2x128xf32>
    %64 = vector.extract_strided_slice %63 {offsets = [0, 0], sizes = [2, 32], strides = [1, 1]} : vector<2x128xf32> to vector<2x32xf32>
    %65 = vector.extract_strided_slice %63 {offsets = [0, 32], sizes = [2, 32], strides = [1, 1]} : vector<2x128xf32> to vector<2x32xf32>
    %66 = vector.extract_strided_slice %63 {offsets = [0, 64], sizes = [2, 32], strides = [1, 1]} : vector<2x128xf32> to vector<2x32xf32>
    %67 = vector.extract_strided_slice %63 {offsets = [0, 96], sizes = [2, 32], strides = [1, 1]} : vector<2x128xf32> to vector<2x32xf32>
    %68 = arith.mulf %65, %51 : vector<2x32xf32>
    %69 = arith.mulf %64, %67 : vector<2x32xf32>
    %70 = arith.addf %68, %69 : vector<2x32xf32>
    %71 = math.tanh %70 : vector<2x32xf32>
    %72 = arith.mulf %66, %71 : vector<2x32xf32>
    %73 = vector.extract_strided_slice %5 {offsets = [6, 0], sizes = [2, 128], strides = [1, 1]} : vector<16x128xf32> to vector<2x128xf32>
    %cst_17 = arith.constant dense<0.000000e+00> : vector<2x128xf32>
    %74 = tpu.matmul %72, %6, %cst_17 {dimension_numbers = #tpu.dot_dimension_numbers<[1], [0], [0], [1], [0, 0, 1, 1], [], []>, precision = #tpu.contract_precision<fp32>} : vector<2x32xf32>, vector<32x128xf32>, vector<2x128xf32> -> vector<2x128xf32>
    %75 = arith.addf %73, %74 : vector<2x128xf32>
    %76 = arith.negf %75 : vector<2x128xf32>
    %77 = math.exp %76 : vector<2x128xf32>
    %cst_18 = arith.constant 1.000000e+00 : f32
    %78 = vector.broadcast %cst_18 : f32 to vector<2x128xf32>
    %79 = arith.addf %78, %77 : vector<2x128xf32>
    %80 = arith.divf %78, %79 : vector<2x128xf32>
    %81 = math.tanh %75 : vector<2x128xf32>
    %82 = arith.select %15, %80, %81 : vector<2x128xi1>, vector<2x128xf32>
    %83 = vector.extract_strided_slice %82 {offsets = [0, 0], sizes = [2, 32], strides = [1, 1]} : vector<2x128xf32> to vector<2x32xf32>
    %84 = vector.extract_strided_slice %82 {offsets = [0, 32], sizes = [2, 32], strides = [1, 1]} : vector<2x128xf32> to vector<2x32xf32>
    %85 = vector.extract_strided_slice %82 {offsets = [0, 64], sizes = [2, 32], strides = [1, 1]} : vector<2x128xf32> to vector<2x32xf32>
    %86 = vector.extract_strided_slice %82 {offsets = [0, 96], sizes = [2, 32], strides = [1, 1]} : vector<2x128xf32> to vector<2x32xf32>
    %87 = arith.mulf %84, %70 : vector<2x32xf32>
    %88 = arith.mulf %83, %86 : vector<2x32xf32>
    %89 = arith.addf %87, %88 : vector<2x32xf32>
    %90 = math.tanh %89 : vector<2x32xf32>
    %91 = arith.mulf %85, %90 : vector<2x32xf32>
    %92 = vector.extract_strided_slice %5 {offsets = [8, 0], sizes = [2, 128], strides = [1, 1]} : vector<16x128xf32> to vector<2x128xf32>
    %cst_19 = arith.constant dense<0.000000e+00> : vector<2x128xf32>
    %93 = tpu.matmul %91, %6, %cst_19 {dimension_numbers = #tpu.dot_dimension_numbers<[1], [0], [0], [1], [0, 0, 1, 1], [], []>, precision = #tpu.contract_precision<fp32>} : vector<2x32xf32>, vector<32x128xf32>, vector<2x128xf32> -> vector<2x128xf32>
    %94 = arith.addf %92, %93 : vector<2x128xf32>
    %95 = arith.negf %94 : vector<2x128xf32>
    %96 = math.exp %95 : vector<2x128xf32>
    %cst_20 = arith.constant 1.000000e+00 : f32
    %97 = vector.broadcast %cst_20 : f32 to vector<2x128xf32>
    %98 = arith.addf %97, %96 : vector<2x128xf32>
    %99 = arith.divf %97, %98 : vector<2x128xf32>
    %100 = math.tanh %94 : vector<2x128xf32>
    %101 = arith.select %15, %99, %100 : vector<2x128xi1>, vector<2x128xf32>
    %102 = vector.extract_strided_slice %101 {offsets = [0, 0], sizes = [2, 32], strides = [1, 1]} : vector<2x128xf32> to vector<2x32xf32>
    %103 = vector.extract_strided_slice %101 {offsets = [0, 32], sizes = [2, 32], strides = [1, 1]} : vector<2x128xf32> to vector<2x32xf32>
    %104 = vector.extract_strided_slice %101 {offsets = [0, 64], sizes = [2, 32], strides = [1, 1]} : vector<2x128xf32> to vector<2x32xf32>
    %105 = vector.extract_strided_slice %101 {offsets = [0, 96], sizes = [2, 32], strides = [1, 1]} : vector<2x128xf32> to vector<2x32xf32>
    %106 = arith.mulf %103, %89 : vector<2x32xf32>
    %107 = arith.mulf %102, %105 : vector<2x32xf32>
    %108 = arith.addf %106, %107 : vector<2x32xf32>
    %109 = math.tanh %108 : vector<2x32xf32>
    %110 = arith.mulf %104, %109 : vector<2x32xf32>
    %111 = vector.extract_strided_slice %5 {offsets = [10, 0], sizes = [2, 128], strides = [1, 1]} : vector<16x128xf32> to vector<2x128xf32>
    %cst_21 = arith.constant dense<0.000000e+00> : vector<2x128xf32>
    %112 = tpu.matmul %110, %6, %cst_21 {dimension_numbers = #tpu.dot_dimension_numbers<[1], [0], [0], [1], [0, 0, 1, 1], [], []>, precision = #tpu.contract_precision<fp32>} : vector<2x32xf32>, vector<32x128xf32>, vector<2x128xf32> -> vector<2x128xf32>
    %113 = arith.addf %111, %112 : vector<2x128xf32>
    %114 = arith.negf %113 : vector<2x128xf32>
    %115 = math.exp %114 : vector<2x128xf32>
    %cst_22 = arith.constant 1.000000e+00 : f32
    %116 = vector.broadcast %cst_22 : f32 to vector<2x128xf32>
    %117 = arith.addf %116, %115 : vector<2x128xf32>
    %118 = arith.divf %116, %117 : vector<2x128xf32>
    %119 = math.tanh %113 : vector<2x128xf32>
    %120 = arith.select %15, %118, %119 : vector<2x128xi1>, vector<2x128xf32>
    %121 = vector.extract_strided_slice %120 {offsets = [0, 0], sizes = [2, 32], strides = [1, 1]} : vector<2x128xf32> to vector<2x32xf32>
    %122 = vector.extract_strided_slice %120 {offsets = [0, 32], sizes = [2, 32], strides = [1, 1]} : vector<2x128xf32> to vector<2x32xf32>
    %123 = vector.extract_strided_slice %120 {offsets = [0, 64], sizes = [2, 32], strides = [1, 1]} : vector<2x128xf32> to vector<2x32xf32>
    %124 = vector.extract_strided_slice %120 {offsets = [0, 96], sizes = [2, 32], strides = [1, 1]} : vector<2x128xf32> to vector<2x32xf32>
    %125 = arith.mulf %122, %108 : vector<2x32xf32>
    %126 = arith.mulf %121, %124 : vector<2x32xf32>
    %127 = arith.addf %125, %126 : vector<2x32xf32>
    %128 = math.tanh %127 : vector<2x32xf32>
    %129 = arith.mulf %123, %128 : vector<2x32xf32>
    %130 = vector.extract_strided_slice %5 {offsets = [12, 0], sizes = [2, 128], strides = [1, 1]} : vector<16x128xf32> to vector<2x128xf32>
    %cst_23 = arith.constant dense<0.000000e+00> : vector<2x128xf32>
    %131 = tpu.matmul %129, %6, %cst_23 {dimension_numbers = #tpu.dot_dimension_numbers<[1], [0], [0], [1], [0, 0, 1, 1], [], []>, precision = #tpu.contract_precision<fp32>} : vector<2x32xf32>, vector<32x128xf32>, vector<2x128xf32> -> vector<2x128xf32>
    %132 = arith.addf %130, %131 : vector<2x128xf32>
    %133 = arith.negf %132 : vector<2x128xf32>
    %134 = math.exp %133 : vector<2x128xf32>
    %cst_24 = arith.constant 1.000000e+00 : f32
    %135 = vector.broadcast %cst_24 : f32 to vector<2x128xf32>
    %136 = arith.addf %135, %134 : vector<2x128xf32>
    %137 = arith.divf %135, %136 : vector<2x128xf32>
    %138 = math.tanh %132 : vector<2x128xf32>
    %139 = arith.select %15, %137, %138 : vector<2x128xi1>, vector<2x128xf32>
    %140 = vector.extract_strided_slice %139 {offsets = [0, 0], sizes = [2, 32], strides = [1, 1]} : vector<2x128xf32> to vector<2x32xf32>
    %141 = vector.extract_strided_slice %139 {offsets = [0, 32], sizes = [2, 32], strides = [1, 1]} : vector<2x128xf32> to vector<2x32xf32>
    %142 = vector.extract_strided_slice %139 {offsets = [0, 64], sizes = [2, 32], strides = [1, 1]} : vector<2x128xf32> to vector<2x32xf32>
    %143 = vector.extract_strided_slice %139 {offsets = [0, 96], sizes = [2, 32], strides = [1, 1]} : vector<2x128xf32> to vector<2x32xf32>
    %144 = arith.mulf %141, %127 : vector<2x32xf32>
    %145 = arith.mulf %140, %143 : vector<2x32xf32>
    %146 = arith.addf %144, %145 : vector<2x32xf32>
    %147 = math.tanh %146 : vector<2x32xf32>
    %148 = arith.mulf %142, %147 : vector<2x32xf32>
    %149 = vector.extract_strided_slice %5 {offsets = [14, 0], sizes = [2, 128], strides = [1, 1]} : vector<16x128xf32> to vector<2x128xf32>
    %cst_25 = arith.constant dense<0.000000e+00> : vector<2x128xf32>
    %150 = tpu.matmul %148, %6, %cst_25 {dimension_numbers = #tpu.dot_dimension_numbers<[1], [0], [0], [1], [0, 0, 1, 1], [], []>, precision = #tpu.contract_precision<fp32>} : vector<2x32xf32>, vector<32x128xf32>, vector<2x128xf32> -> vector<2x128xf32>
    %151 = arith.addf %149, %150 : vector<2x128xf32>
    %152 = arith.negf %151 : vector<2x128xf32>
    %153 = math.exp %152 : vector<2x128xf32>
    %cst_26 = arith.constant 1.000000e+00 : f32
    %154 = vector.broadcast %cst_26 : f32 to vector<2x128xf32>
    %155 = arith.addf %154, %153 : vector<2x128xf32>
    %156 = arith.divf %154, %155 : vector<2x128xf32>
    %157 = math.tanh %151 : vector<2x128xf32>
    %158 = arith.select %15, %156, %157 : vector<2x128xi1>, vector<2x128xf32>
    %159 = vector.extract_strided_slice %158 {offsets = [0, 0], sizes = [2, 32], strides = [1, 1]} : vector<2x128xf32> to vector<2x32xf32>
    %160 = vector.extract_strided_slice %158 {offsets = [0, 32], sizes = [2, 32], strides = [1, 1]} : vector<2x128xf32> to vector<2x32xf32>
    %161 = vector.extract_strided_slice %158 {offsets = [0, 64], sizes = [2, 32], strides = [1, 1]} : vector<2x128xf32> to vector<2x32xf32>
    %162 = vector.extract_strided_slice %158 {offsets = [0, 96], sizes = [2, 32], strides = [1, 1]} : vector<2x128xf32> to vector<2x32xf32>
    %163 = arith.mulf %160, %146 : vector<2x32xf32>
    %164 = arith.mulf %159, %162 : vector<2x32xf32>
    %165 = arith.addf %163, %164 : vector<2x32xf32>
    %166 = math.tanh %165 : vector<2x32xf32>
    %167 = arith.mulf %161, %166 : vector<2x32xf32>
    %168 = tpu.concatenate %34, %53, %72, %91, %110, %129, %148, %167 in 0 : vector<2x32xf32>, vector<2x32xf32>, vector<2x32xf32>, vector<2x32xf32>, vector<2x32xf32>, vector<2x32xf32>, vector<2x32xf32>, vector<2x32xf32> -> vector<16x32xf32>
    %c0_27 = arith.constant 0 : index
    %c0_28 = arith.constant 0 : index
    %169 = vector.load %arg7[%c0_27, %c0_28] : memref<16x32xf32, #tpu.memory_space<vmem>>, vector<16x32xf32>
    tpu.vector_store %arg7[%c0_27, %c0_28], %168 {strides = array<i32>} : memref<16x32xf32, #tpu.memory_space<vmem>>, vector<16x32xf32>,
    return
  }
  func.func @transform_0(%arg0: i32) -> (i32, i32) {
    %c0_i32 = arith.constant 0 : i32
    %c0_i32_0 = arith.constant 0 : i32
    %c0_i32_1 = arith.constant 0 : i32
    return %c0_i32, %c0_i32_0 : i32, i32
  }
  func.func @transform_1(%arg0: i32) -> (i32, i32) {
    %c0_i32 = arith.constant 0 : i32
    %c0_i32_0 = arith.constant 0 : i32
    %c0_i32_1 = arith.constant 0 : i32
    return %c0_i32, %c0_i32_0 : i32, i32
  }
  func.func @transform_2(%arg0: i32) -> (i32, i32) {
    %c0_i32 = arith.constant 0 : i32
    %c0_i32_0 = arith.constant 0 : i32
    %c0_i32_1 = arith.constant 0 : i32
    return %c0_i32, %c0_i32_0 : i32, i32
  }
  func.func @transform_3(%arg0: i32) -> (i32, i32) {
    %c0_i32 = arith.constant 0 : i32
    %c0_i32_0 = arith.constant 0 : i32
    %c0_i32_1 = arith.constant 0 : i32
    return %c0_i32, %c0_i32_0 : i32, i32
  }
  func.func @transform_4(%arg0: i32) -> (i32, i32) {
    %c0_i32 = arith.constant 0 : i32
    %c0_i32_0 = arith.constant 0 : i32
    %c0_i32_1 = arith.constant 0 : i32
    return %c0_i32, %c0_i32_0 : i32, i32
  }
  func.func @transform_5(%arg0: i32) -> (i32, i32) {
    %c0_i32 = arith.constant 0 : i32
    %c0_i32_0 = arith.constant 0 : i32
    %c0_i32_1 = arith.constant 0 : i32
    return %c0_i32, %c0_i32_0 : i32, i32
  }
  func.func @transform_6(%arg0: i32) -> (i32, i32) {
    %c0_i32 = arith.constant 0 : i32
    %c0_i32_0 = arith.constant 0 : i32
    %c0_i32_1 = arith.constant 0 : i32
    return %c0_i32, %c0_i32_0 : i32, i32
  }
}

</mosaic_0001>

<bundles_post_ra>
// kernel: encoder_lstm_forward.1
= control target key start
LH: loop header
LB: loop body
LE: loop exit
PB: predicated region body
PF: predicated region fallthrough
CT: control target
= control target key end

     0   :  { %11 = vsyncpa [#allocation3], 0  ;;  %s6604_s0 = inlined_call_operand.hbm [shape: f32[16,16], index: 0, kind: input, shape index: {}]   ;;  %s6605_s1 = inlined_call_operand.hbm [shape: f32[16,128], index: 1, kind: input, shape index: {}]   ;;  %s6606_s2 = inlined_call_operand.hbm [shape: f32[32,128], index: 2, kind: input, shape index: {}]   ;;  %s6607_s3 = inlined_call_operand.vmem [shape: f32[1,128], index: 3, kind: input, shape index: {}]   ;;  %s6608_s4 = inlined_call_operand.vmem [shape: f32[1,32], index: 4, kind: input, shape index: {}]   ;;  %s6609_s5 = inlined_call_operand.vmem [shape: f32[1,32], index: 5, kind: input, shape index: {}]   ;;  %s6610_s6 = inlined_call_operand.hbm [shape: f32[16,32], index: 6, kind: output, shape index: {}]  }
   0x1   :  { %12 = vsyncpa [#allocation6], 0 }
   0x2   :  { %13 = vsyncpa [#allocation4], 0  ;;  %s5819_s21 = smov [#allocation5]   ;;  %s5820_s23 = smov [#allocation2]  }
   0x3   :  { %s31_s22 = sshll.u32 %s5819_s21, 4  ;;  %s19_s24 = sshll.u32 %s5820_s23, 4  ;;  %s32_s22 = int_to_ptr.vmem [resolvable:$true] %s31_s22  ;;  %s20_s24 = int_to_ptr.vmem [resolvable:$true] %s19_s24 }
   0x4   :  { %s5741_s25 = scalar_lea.vmem %s32_s22, 256  ;;  %p5746_p1 = scmp.lt.s32.totalorder %s32_s22, %s32_s22 }
   0x5   :  { %p5742_p0 = scmp.ne.s32.totalorder %s32_s22, %s5741_s25  ;;  %p5747_p2 = scmp.lt.s32.totalorder %s5741_s25, %s5741_s25 }
   0x7   :  { %p5748_p3 = por %p5747_p2, %p5746_p1 }
   0x9   :  { %p5749_p4 = pnand %p5748_p3, %p5742_p0 }
   0xb   :  { %5752 = shalt.err (!%p5749_p4)
}
   0xc   :  { %s5821_s26 = smov 128   ;;  %s5822_s27 = smov 8  }
   0xd   :  { %37 = dma.hbm_to_vmem [thread:$0]  %s6605_s1, 256, %s32_s22, [#allocation6], %s5821_s26, %s5821_s26, %s5822_s27  }
   0xe   :  { %s5761_s30 = scalar_lea.vmem %s20_s24, 256  ;;  %p5766_p6 = scmp.lt.s32.totalorder %s20_s24, %s20_s24 }
   0xf   :  { %p5762_p5 = scmp.ne.s32.totalorder %s20_s24, %s5761_s30  ;;  %p5767_p7 = scmp.lt.s32.totalorder %s5761_s30, %s5761_s30 }
  0x11   :  { %p5768_p8 = por %p5767_p7, %p5766_p6 }
  0x13   :  { %p5769_p9 = pnand %p5768_p8, %p5762_p5 }
  0x15   :  { %5772 = shalt.err (!%p5769_p9)
}
  0x16   :  { %25 = dma.hbm_to_vmem [thread:$0]  %s6604_s0, 256, %s20_s24, [#allocation3], %s5821_s26, %s5821_s26, %s5822_s27  }
  0x17   :  { %s5823_s9 = smov [#allocation7]  }
  0x18   :  { %s43_s10 = sshll.u32 %s5823_s9, 4  ;;  %s44_s10 = int_to_ptr.vmem [resolvable:$true] %s43_s10 }
  0x19   :  { %s5781_s11 = scalar_lea.vmem %s44_s10, 512  ;;  %p5786_p11 = scmp.lt.s32.totalorder %s44_s10, %s44_s10 }
  0x1a   :  { %p5782_p10 = scmp.ne.s32.totalorder %s44_s10, %s5781_s11  ;;  %p5787_p12 = scmp.lt.s32.totalorder %s5781_s11, %s5781_s11 }
  0x1c   :  { %p5788_p13 = por %p5787_p12, %p5786_p11 }
  0x1e   :  { %p5789_p0 = pnand %p5788_p13, %p5782_p10 }
  0x20   :  { %5792 = shalt.err (!%p5789_p0)
}
  0x21   :  { %49 = dma.hbm_to_vmem [thread:$0]  %s6606_s2, 512, %s44_s10, [#allocation6], %s5821_s26, %s5821_s26, %s5822_s27  }
  0x22   :  { %5813 = dma.done.wait [#allocation3], 256  }
  0x23   :  { %5814 = vsyncadd [#allocation3], 4294967040 }
  0x24   :  { %5815 = dma.done.wait [#allocation6], 768  }
  0x25   :  { %5816 = vsyncadd [#allocation6], 4294966528  ;;  %vm76_vm0 = vcmask 130048   ;;  %v68_v0 = vld [vmem:[#allocation5 + $0x8] sm:$0xff]  ;;  %v67_v1 = vld [vmem:[#allocation5] sm:$0xff]  ;;  %vm604_vm1 = vcmask 261120  }
  0x26   :  { %v65_v2 = vld [vmem:[#allocation2] sm:$0xff]  ;;  %v5882_v3 = vand.u32 4294901760, %v68_v0  ;;  %v5884_v4 = vand.u32 4294901760, %v67_v1  ;;  %v66_v5 = vld [vmem:[#allocation2 + $0x8] sm:$0xff]  ;;  %v588_v17 = vld [vmem:[#allocation7 + $0x18] sm:$0xff]  ;;  %v5824_v48 = vmov 0.0  }
  0x27   :  { %v78_v6 = vsel %vm76_vm0, %v65_v2, 0  ;;  %v81_v7 = vsel %vm76_vm0, %v66_v5, 0  ;;  %v4815_v21 = vld [vmem:[%s6608_s4] ss:$0 sm:$0xff]  ;;  %v587_v23 = vld [vmem:[#allocation7 + $0x10] sm:$0xff]  ;;  %v5902_v27 = vand.u32 4294901760, %v588_v17 }
  0x28   :  { %v5886_v8 = vand.u32 4294901760, %v78_v6  ;;  %5089 = vmatprep.subr.mxu0 %v5882_v3  ;;  %v200_v9 = vsub.f32 %v68_v0, %v5882_v3  ;;  %v5890_v10 = vand.u32 4294901760, %v81_v7  ;;  %v207_v11 = vsub.f32 %v67_v1, %v5884_v4  ;;  %v586_v32 = vld [vmem:[#allocation7 + $0x8] sm:$0xff]  ;;  %v585_v34 = vld [vmem:[#allocation7] sm:$0xff]  ;;  %s5828_s16 = smov [#allocation8]  }
  0x29   :  { %5090 = vmatpush3.msra.mxu0 %v5882_v3  ;;  %v605_v29 = vsel %vm604_vm1, %v4815_v21, 0  ;;  %v5905_v31 = vand.u32 4294901760, %v587_v23  ;;  %v5908_v33 = vsub.f32 %v588_v17, %v5902_v27  ;;  %v5912_v36 = vand.u32 4294901760, %v586_v32  ;;  %v4814_v58 = vld [vmem:[%s6607_s3] ss:$0 sm:$0xff]  ;;  %s5826_s3 = smov 32  }
  0x2a   :  { %v151_v12 = vsub.f32 %v78_v6, %v5886_v8  ;;  %5100 = vmatprep.mubr.f32.mxu1 %v5886_v8  ;;  %5091 = vmatprep.subr.mxu0 %v5884_v4  ;;  %v201_v13 = vand.u32 4294901760, %v200_v9  ;;  %v161_v14 = vsub.f32 %v81_v7, %v5890_v10  ;;  %v208_v15 = vand.u32 4294901760, %v207_v11  ;;  %s4801_s17 = sshll.u32 %s5828_s16, 4  ;;  %s4802_s17 = int_to_ptr.vmem [resolvable:$true] %s4801_s17 }
  0x2b   :  { %5092 = vmatpush3.msra.mxu0 %v5884_v4  ;;  %v5910_v35 = vand.u32 4294901760, %v605_v29  ;;  %v5916_v37 = vsub.f32 %v587_v23, %v5905_v31  ;;  %v5919_v38 = vand.u32 4294901760, %v585_v34  ;;  %v5923_v39 = vand.u32 4294901760, %v5908_v33  ;;  %s5793_s18 = scalar_lea.vmem %s4802_s17, 256  ;;  %p5798_p2 = scmp.lt.s32.totalorder %s4802_s17, %s4802_s17 }
  0x2c   :  { %v152_v16 = vand.u32 4294901760, %v151_v12  ;;  %v202_v18 = vsub.f32 %v200_v9, %v201_v13  ;;  %5103 = vmatprep.subr.mxu0 %v200_v9  ;;  %v162_v19 = vand.u32 4294901760, %v161_v14  ;;  %v209_v20 = vsub.f32 %v207_v11, %v208_v15  ;;  %p5794_p1 = scmp.ne.s32.totalorder %s4802_s17, %s5793_s18  ;;  %p5799_p3 = scmp.lt.s32.totalorder %s5793_s18, %s5793_s18 }
  0x2d   :  { %v5926_v40 = vsub.f32 %v605_v29, %v5910_v35  ;;  %v5929_v41 = vsub.f32 %v586_v32, %v5912_v36  ;;  %v5933_v42 = vand.u32 4294901760, %v5916_v37  ;;  %v5937_v43 = vsub.f32 %v585_v34, %v5919_v38 }
  0x2e   :  { %v153_v22 = vsub.f32 %v151_v12, %v152_v16  ;;  %v203_v24 = vand.u32 4294901760, %v202_v18  ;;  %v163_v25 = vsub.f32 %v161_v14, %v162_v19  ;;  %v210_v26 = vand.u32 4294901760, %v209_v20  ;;  %p5800_p4 = por %p5799_p3, %p5798_p2 }
  0x2f   :  { %v714_v44 = vsub.f32 %v5908_v33, %v5923_v39  ;;  %v678_v45 = vand.u32 4294901760, %v5926_v40  ;;  %v5944_v46 = vand.u32 4294901760, %v5929_v41  ;;  %v721_v47 = vsub.f32 %v5916_v37, %v5933_v42 }
  0x30   :  { %v154_v28 = vand.u32 4294901760, %v153_v22  ;;  %5096 = vmatprep.subr.mxu1 %v203_v24  ;;  %v164_v30 = vand.u32 4294901760, %v163_v25  ;;  %v5953_v49 = vand.u32 4294901760, %v5937_v43  ;;  %vm5825_vm2 = vmmov 0   ;;  %p5801_p5 = pnand %p5800_p4, %p5794_p1 }
  0x31   :  { %5097 = vmatpush3.msra.mxu1 %v203_v24  ;;  %v5957_v50 = vand.u32 4294901760, %v714_v44  ;;  %v679_v51 = vsub.f32 %v5926_v40, %v678_v45  ;;  %v728_v52 = vsub.f32 %v5929_v41, %v5944_v46  ;;  %v5968_v53 = vand.u32 4294901760, %v721_v47 }
  0x32   :  { %5093 = vmatprep.mubr.f32.mxu0 %v154_v28  ;;  %5098 = vmatprep.subr.mxu1 %v210_v26  ;;  %v735_v54 = vsub.f32 %v5937_v43, %v5953_v49  ;;  %vm4777_vm4 = vcmask 1041408   ;;  %vm4779_vm5 = vcmask 1043456   ;;  %vm4781_vm6 = vcmask 1045504  }
  0x33   :  { %5094 = vmatmul.mubr.f32.vlgmr.msra.gmra.mxu0 %v164_v30  ;;  %5099 = vmatpush3.msra.mxu1 %v210_v26  ;;  %v680_v55 = vand.u32 4294901760, %v679_v51  ;;  %v5978_v56 = vand.u32 4294901760, %v728_v52 }
  0x34   :  { %5104 = vmatpush3.msra.mxu0 %v200_v9  ;;  %5101 = vmatmul.mubr.f32.vlgmr.msra.gmra.mxu1 %v5890_v10  ;;  %v5985_v57 = vand.u32 4294901760, %v735_v54 }
  0x35   :  { %5105 = vmatprep.subr.mxu0 %v207_v11  ;;  %5110 = vmatprep.subr.mxu1 %v5882_v3 }
  0x36   :  { %5106 = vmatpush3.msra.mxu0 %v207_v11  ;;  %5107 = vmatprep.mubr.f32.mxu0 %v151_v12 }
  0x37   :  { %5111 = vmatpush3.msra.mxu1 %v5882_v3  ;;  %5117 = vmatprep.subr.mxu0 %v201_v13 }
  0x38   :  { %5108 = vmatmul.mubr.f32.vlgmr.msra.gmra.mxu0 %v161_v14  ;;  %5112 = vmatprep.subr.mxu1 %v5884_v4 }
  0x39   :  { %5118 = vmatpush3.msra.mxu0 %v201_v13  ;;  %5113 = vmatpush3.msra.mxu1 %v5884_v4 }
  0x3a   :  { %5114 = vmatprep.mubr.f32.mxu1 %v152_v16  ;;  %5119 = vmatprep.subr.mxu0 %v208_v15 }
  0x3b   :  { %5115 = vmatmul.mubr.f32.vlgmr.msra.gmra.mxu1 %v162_v19  ;;  %5120 = vmatpush3.msra.mxu0 %v208_v15 }
  0x3c   :  { %5124 = vmatprep.subr.mxu1 %v5882_v3  ;;  %5121 = vmatprep.mubr.f32.mxu0 %v5886_v8 }
  0x3d   :  { %5125 = vmatpush3.msra.mxu1 %v5882_v3  ;;  %5131 = vmatprep.subr.mxu0 %v5824_v48 }
  0x3e   :  { %5122 = vmatmul.mubr.f32.vlgmr.msra.gmra.mxu0 %v5890_v10  ;;  %5126 = vmatprep.subr.mxu1 %v5884_v4 }
  0x3f   :  { %5132 = vmatpush3.msra.mxu0 %v5902_v27  ;;  %5127 = vmatpush3.msra.mxu1 %v5884_v4 }
  0x40   :  { %5128 = vmatprep.mubr.f32.mxu1 %v5886_v8  ;;  %5133 = vmatprep.subr.mxu0 %v5824_v48 }
  0x41   :  { %5129 = vmatmul.mubr.f32.vlgmr.msra.gmra.mxu1 %v5890_v10  ;;  %5134 = vmatpush3.msra.mxu0 %v5905_v31 }
  0x42   :  { %5142 = vmatprep.subr.mxu1 %v5824_v48  ;;  %5135 = vmatprep.subr.mxu0 %v5824_v48 }
  0x43   :  { %5143 = vmatpush3.msra.mxu1 %v5957_v50  ;;  %5136 = vmatpush3.msra.mxu0 %v5912_v36 }
  0x44   :  { %5144 = vmatprep.subr.mxu1 %v5824_v48  ;;  %5137 = vmatprep.subr.mxu0 %v5824_v48 }
  0x45   :  { %5145 = vmatpush3.msra.mxu1 %v5968_v53  ;;  %5138 = vmatpush3.msra.mxu0 %v5919_v38 }
  0x46   :  { %5139 = vmatprep.mubr.msk.f32.mxu0 %vm5825_vm2, %v5824_v48  ;;  %5146 = vmatprep.subr.mxu1 %v5824_v48 }
  0x47   :  { %5140 = vmatmul.mubr.f32.vlgmr.msra.gmra.mxu0 %v680_v55  ;;  %5147 = vmatpush3.msra.mxu1 %v5978_v56  ;;  %v601_v55 = vlaneseq }
  0x48   :  { %5153 = vmatprep.subr.mxu0 %v5824_v48  ;;  %5148 = vmatprep.subr.mxu1 %v5824_v48 }
  0x49   :  { %5154 = vmatpush3.msra.mxu0 %v5908_v33  ;;  %5149 = vmatpush3.msra.mxu1 %v5985_v57 }
  0x4a   :  { %5150 = vmatprep.mubr.msk.f32.mxu1 %vm5825_vm2, %v5824_v48  ;;  %5155 = vmatprep.subr.mxu0 %v5824_v48 }
  0x4b   :  { %5151 = vmatmul.mubr.f32.vlgmr.msra.gmra.mxu1 %v5910_v35  ;;  %5156 = vmatpush3.msra.mxu0 %v5916_v37 }
  0x4c   :  { %5164 = vmatprep.subr.mxu1 %v5824_v48  ;;  %5157 = vmatprep.subr.mxu0 %v5824_v48 }
  0x4d   :  { %5165 = vmatpush3.msra.mxu1 %v5902_v27  ;;  %5158 = vmatpush3.msra.mxu0 %v5929_v41 }
  0x4e   :  { %5166 = vmatprep.subr.mxu1 %v5824_v48  ;;  %5159 = vmatprep.subr.mxu0 %v5824_v48 }
  0x4f   :  { %5167 = vmatpush3.msra.mxu1 %v5905_v31  ;;  %5160 = vmatpush3.msra.mxu0 %v5937_v43 }
  0x50   :  { %5161 = vmatprep.mubr.msk.f32.mxu0 %vm5825_vm2, %v5824_v48  ;;  %5168 = vmatprep.subr.mxu1 %v5824_v48 }
  0x51   :  { %5162 = vmatmul.mubr.f32.vlgmr.msra.gmra.mxu0 %v5926_v40  ;;  %5169 = vmatpush3.msra.mxu1 %v5912_v36 }
  0x52   :  { %5175 = vmatprep.subr.mxu0 %v5824_v48  ;;  %5170 = vmatprep.subr.mxu1 %v5824_v48 }
  0x53   :  { %5176 = vmatpush3.msra.mxu0 %v5923_v39  ;;  %5171 = vmatpush3.msra.mxu1 %v5919_v38 }
  0x54   :  { %5172 = vmatprep.mubr.msk.f32.mxu1 %vm5825_vm2, %v5824_v48  ;;  %5177 = vmatprep.subr.mxu0 %v5824_v48 }
  0x55   :  { %5173 = vmatmul.mubr.f32.vlgmr.msra.gmra.mxu1 %v678_v45  ;;  %5178 = vmatpush3.msra.mxu0 %v5933_v42 }
  0x56   :  { %5186 = vmatprep.subr.mxu1 %v5824_v48  ;;  %5179 = vmatprep.subr.mxu0 %v5824_v48 }
  0x57   :  { %5187 = vmatpush3.msra.mxu1 %v5902_v27  ;;  %5180 = vmatpush3.msra.mxu0 %v5944_v46 }
  0x58   :  { %5188 = vmatprep.subr.mxu1 %v5824_v48  ;;  %5181 = vmatprep.subr.mxu0 %v5824_v48 }
  0x59   :  { %5189 = vmatpush3.msra.mxu1 %v5905_v31  ;;  %5182 = vmatpush3.msra.mxu0 %v5953_v49 }
  0x5a   :  { %5183 = vmatprep.mubr.msk.f32.mxu0 %vm5825_vm2, %v5824_v48  ;;  %5190 = vmatprep.subr.mxu1 %v5824_v48 }
  0x5b   :  { %5184 = vmatmul.mubr.f32.vlgmr.msra.gmra.mxu0 %v5910_v35  ;;  %5191 = vmatpush3.msra.mxu1 %v5912_v36 }
  0x5c   :  { %5194 = vmatprep.mubr.msk.f32.mxu1 %vm5825_vm2, %v5824_v48  ;;  %5192 = vmatprep.subr.mxu1 %v5824_v48 }
  0x5d   :  { %5197 = vmatprep.subr.mxu0 %v5824_v48  ;;  %5193 = vmatpush3.msra.mxu1 %v5919_v38 }
  0x5e   :  { %5198 = vmatpush3.msra.mxu0 %v5902_v27  ;;  %5195 = vmatmul.mubr.f32.vlgmr.msra.gmra.mxu1 %v5910_v35 }
  0x5f   :  { %5208 = vmatprep.subr.mxu1 %v5824_v48  ;;  %5216 = vmatprep.mubr.msk.f32.mxu1 %vm5825_vm2, %v5824_v48 }
  0x60   :  { %5209 = vmatpush3.msra.mxu1 %v5957_v50  ;;  %5199 = vmatprep.subr.mxu0 %v5824_v48 }
  0x61   :  { %5210 = vmatprep.subr.mxu1 %v5824_v48  ;;  %5200 = vmatpush3.msra.mxu0 %v5905_v31 }
  0x62   :  { %5211 = vmatpush3.msra.mxu1 %v5968_v53  ;;  %5201 = vmatprep.subr.mxu0 %v5824_v48 }
  0x63   :  { %5212 = vmatprep.subr.mxu1 %v5824_v48  ;;  %5202 = vmatpush3.msra.mxu0 %v5912_v36 }
  0x64   :  { %5213 = vmatpush3.msra.mxu1 %v5978_v56  ;;  %5203 = vmatprep.subr.mxu0 %v5824_v48 }
  0x65   :  { %5214 = vmatprep.subr.mxu1 %v5824_v48  ;;  %5204 = vmatpush3.msra.mxu0 %v5919_v38 }
  0x66   :  { %5215 = vmatpush3.msra.mxu1 %v5985_v57  ;;  %5205 = vmatprep.mubr.msk.f32.mxu0 %vm5825_vm2, %v5824_v48 }
  0x67   :  { %5230 = vmatprep.subr.mxu1 %v5824_v48  ;;  %5219 = vmatprep.subr.mxu0 %v5824_v48 }
  0xf3   :  { %v5095_v59 = vpop.f32.mrf.mxu0 }
  0xf4   :  { %v167_v60 = vadd.f32 %v5095_v59, %v4814_v58  ;;  %v5102_v62 = vpop.f32.mrf.mxu1 }
  0xf5   :  { %v156_v61 = vpop.f32.mrf.mxu0 }
  0xf6   :  { %v254_v63 = vadd.f32 %v5102_v62, %v167_v60  ;;  %v247_v0 = vpop.f32.mrf.mxu1  ;;  %v157_v16 = vadd.f32 %v4814_v58, %v156_v61  ;;  %v6069_v58 = vand.u32 127, %v601_v55  ;;  %v4816_v62 = vld [vmem:[%s6609_s5] ss:$0 sm:$0xff]  ;;  %s5827_s5 = smov 64  }
  0xf8   :  { %v5109_v1 = vpop.f32.mrf.mxu0  ;;  %v248_v18 = vadd.f32 %v247_v0, %v157_v16  ;;  %vm603_vm3 = vcmp.lt.s32.totalorder %v6069_v58, 96 }
  0xf9   :  { %v337_v2 = vadd.f32 %v5109_v1, %v254_v63 }
  0xfa   :  { %v329_v3 = vpop.f32.mrf.mxu0 }
  0xfb   :  { %v5116_v4 = vpop.f32.mrf.mxu1  ;;  %v330_v21 = vadd.f32 %v329_v3, %v248_v18 }
  0xfc   :  { %v420_v5 = vadd.f32 %v5116_v4, %v337_v2 }
  0xfd   :  { %v411_v6 = vpop.f32.mrf.mxu1 }
  0xfe   :  { %v5123_v7 = vpop.f32.mrf.mxu0  ;;  %v412_v26 = vadd.f32 %v411_v6, %v330_v21 }
  0xff   :  { %v503_v8 = vadd.f32 %v5123_v7, %v420_v5 }
 0x100   :  { %v496_v11 = vpop.f32.mrf.mxu0 }
 0x101   :  { %v5130_v9 = vpop.f32.mrf.mxu1  ;;  %v497_v30 = vadd.f32 %v496_v11, %v412_v26 }
 0x102   :  { %v6064_v10 = vadd.f32 %v5130_v9, %v503_v8 }
 0x103   :  { %v575_v13 = vpop.f32.mrf.mxu1 }
 0x104   :  { %v6066_v40 = vadd.f32 %v575_v13, %v497_v30 }
 0x107   :  { %v682_v12 = vpop.f32.mrf.mxu0 }
 0x109   :  { %v5141_v14 = vpop.f32.mrf.mxu0 }
 0x10b   :  { %v773_v15 = vpop.f32.mrf.mxu1 }
 0x10c   :  { %v774_v22 = vadd.f32 %v773_v15, %v682_v12 }
 0x10d   :  { %v5152_v17 = vpop.f32.mrf.mxu1 }
 0x111   :  { %v853_v19 = vpop.f32.mrf.mxu0 }
 0x112   :  { %v854_v24 = vadd.f32 %v853_v19, %v774_v22 }
 0x113   :  { %v5163_v20 = vpop.f32.mrf.mxu0 }
 0x115   :  { %v930_v23 = vpop.f32.mrf.mxu1 }
 0x116   :  { %v931_v28 = vadd.f32 %v930_v23, %v854_v24 }
 0x117   :  { %v5174_v25 = vpop.f32.mrf.mxu1 }
 0x11b   :  { %v1013_v29 = vpop.f32.mrf.mxu0 }
 0x11c   :  { %v1014_v32 = vadd.f32 %v1013_v29, %v931_v28 }
 0x11d   :  { %v5185_v34 = vpop.f32.mrf.mxu0 }
 0x11e   :  { %v1088_v35 = vpop.f32.mrf.mxu1 }
 0x11f   :  { %v1089_v44 = vadd.f32 %v1088_v35, %v1014_v32 }
 0x120   :  { %v5196_v45 = vpop.f32.mrf.mxu1 }
 0x121   :  { %v1092_v47 = vadd.f32 %v1089_v44, %v6066_v40 }
 0x123   :  { %v4817_v51 = vmul.f32 -1.442695, %v1092_v47 }
 0x125   :  { %5669 = vpow2.f32 %v4817_v51 }
 0x126   :  { %5671 = vtanh.f32 %v1092_v47 }
 0x132   :  { %v5670_v52 = vpop.eup %5669 }
 0x133   :  { %v1096_v54 = vadd.f32 1.0, %v5670_v52  ;;  %v5672_v59 = vpop.eup %5671 }
 0x135   :  { %5673 = vrcp.f32 %v1096_v54 }
 0x142   :  { %v5674_v60 = vpop.eup %5673 }
 0x143   :  { %v1100_v61 = vsel %vm603_vm3, %v5674_v60, %v5672_v59 }
 0x144   :  { %1106 = vrot.lane.b32.xlu0 %v1100_v61, %s5826_s3 }
 0x148   :  { %1101 = vrot.lane.b32.xlu0 %v4816_v62, %s5826_s3 }
 0x1b6   :  { %v1107_v63 = vpop.permute.xlu0 %1106 }
 0x1b7   :  { %v1109_v0 = vmul.f32 %v1107_v63, %v1100_v61 }
 0x1b9   :  { %1111 = vrot.lane.b32.xlu1 %v1109_v0, %s5826_s3 }
 0x1ba   :  { %v1102_v1 = vpop.permute.xlu0 %1101 }
 0x1bb   :  { %v1104_v2 = vmul.f32 %v1102_v1, %v1100_v61 }
 0x22b   :  { %v1112_v3 = vpop.permute.xlu1 %1111 }
 0x22c   :  { %v6080_v4 = vadd.f32 %v1112_v3, %v1104_v2 }
 0x22e   :  { %5675 = vtanh.f32 %v6080_v4  ;;  %v1624_v62 = vrot.slane %v6080_v4, 6 }
 0x23b   :  { %v5676_v5 = vpop.eup %5675 }
 0x23c   :  { %1117 = vrot.lane.b32.xlu1 %v5676_v5, %s5826_s3 }
 0x2ae   :  { %v1118_v6 = vpop.permute.xlu1 %1117 }
 0x2af   :  { %v6084_v7 = vmul.f32 %v1118_v6, %v1100_v61 }
 0x2b1   :  { %1122 = vrot.lane.b32.xlu0 %v6084_v7, %s5827_s5 }
 0x323   :  { %v1123_v8 = vpop.permute.xlu0 %1122 }
 0x324   :  { %v1124_v9 = vsel %vm604_vm1, %v1123_v8, 0 }
 0x325   :  { %v1195_v11 = vand.u32 4294901760, %v1124_v9 }
 0x327   :  { %v1196_v12 = vsub.f32 %v1124_v9, %v1195_v11  ;;  %5217 = vmatmul.mubr.f32.vlgmr.msra.gmra.mxu1 %v1195_v11 }
 0x328   :  { %5231 = vmatpush3.msra.mxu1 %v5902_v27  ;;  %5238 = vmatprep.mubr.msk.f32.mxu1 %vm5825_vm2, %v5824_v48 }
 0x329   :  { %v1197_v13 = vand.u32 4294901760, %v1196_v12  ;;  %5232 = vmatprep.subr.mxu1 %v5824_v48 }
 0x32a   :  { %5233 = vmatpush3.msra.mxu1 %v5905_v31 }
 0x32b   :  { %v1198_v14 = vsub.f32 %v1196_v12, %v1197_v13  ;;  %5234 = vmatprep.subr.mxu1 %v5824_v48 }
 0x32c   :  { %5235 = vmatpush3.msra.mxu1 %v5912_v36 }
 0x32d   :  { %v1199_v15 = vand.u32 4294901760, %v1198_v14  ;;  %5236 = vmatprep.subr.mxu1 %v5824_v48 }
 0x32e   :  { %5237 = vmatpush3.msra.mxu1 %v5919_v38 }
 0x32f   :  { %5239 = vmatmul.mubr.f32.vlgmr.msra.gmra.mxu1 %v1197_v13  ;;  %5252 = vmatprep.subr.mxu1 %v5824_v48 }
 0x330   :  { %5206 = vmatmul.mubr.f32.vlgmr.msra.gmra.mxu0 %v1199_v15  ;;  %5253 = vmatpush3.msra.mxu1 %v5902_v27 }
 0x331   :  { %5220 = vmatpush3.msra.mxu0 %v5908_v33  ;;  %5254 = vmatprep.subr.mxu1 %v5824_v48 }
 0x332   :  { %5221 = vmatprep.subr.mxu0 %v5824_v48  ;;  %5255 = vmatpush3.msra.mxu1 %v5905_v31 }
 0x333   :  { %5222 = vmatpush3.msra.mxu0 %v5916_v37  ;;  %5256 = vmatprep.subr.mxu1 %v5824_v48 }
 0x334   :  { %5223 = vmatprep.subr.mxu0 %v5824_v48  ;;  %5257 = vmatpush3.msra.mxu1 %v5912_v36 }
 0x335   :  { %5224 = vmatpush3.msra.mxu0 %v5929_v41  ;;  %5258 = vmatprep.subr.mxu1 %v5824_v48 }
 0x336   :  { %5225 = vmatprep.subr.mxu0 %v5824_v48  ;;  %5227 = vmatprep.mubr.msk.f32.mxu0 %vm5825_vm2, %v5824_v48 }
 0x337   :  { %5226 = vmatpush3.msra.mxu0 %v5937_v43  ;;  %5259 = vmatpush3.msra.mxu1 %v5919_v38 }
 0x338   :  { %5260 = vmatprep.mubr.msk.f32.mxu1 %vm5825_vm2, %v5824_v48  ;;  %5228 = vmatmul.mubr.f32.vlgmr.msra.gmra.mxu0 %v1196_v12 }
 0x339   :  { %5241 = vmatprep.subr.mxu0 %v5824_v48  ;;  %5261 = vmatmul.mubr.f32.vlgmr.msra.gmra.mxu1 %v1195_v11 }
 0x33a   :  { %5242 = vmatpush3.msra.mxu0 %v5923_v39  ;;  %5249 = vmatprep.mubr.msk.f32.mxu0 %vm5825_vm2, %v5824_v48 }
 0x33b   :  { %5243 = vmatprep.subr.mxu0 %v5824_v48  ;;  %5274 = vmatprep.subr.mxu1 %v5824_v48 }
 0x33c   :  { %5244 = vmatpush3.msra.mxu0 %v5933_v42  ;;  %5275 = vmatpush3.msra.mxu1 %v5957_v50 }
 0x33d   :  { %5245 = vmatprep.subr.mxu0 %v5824_v48  ;;  %5276 = vmatprep.subr.mxu1 %v5824_v48 }
 0x33e   :  { %5246 = vmatpush3.msra.mxu0 %v5944_v46  ;;  %5277 = vmatpush3.msra.mxu1 %v5968_v53 }
 0x33f   :  { %5247 = vmatprep.subr.mxu0 %v5824_v48  ;;  %5278 = vmatprep.subr.mxu1 %v5824_v48 }
 0x340   :  { %5248 = vmatpush3.msra.mxu0 %v5953_v49  ;;  %5279 = vmatpush3.msra.mxu1 %v5978_v56 }
 0x341   :  { %5250 = vmatmul.mubr.f32.vlgmr.msra.gmra.mxu0 %v1195_v11  ;;  %5280 = vmatprep.subr.mxu1 %v5824_v48 }
 0x342   :  { %5281 = vmatpush3.msra.mxu1 %v5985_v57  ;;  %5263 = vmatprep.subr.mxu0 %v5824_v48 }
 0x343   :  { %5282 = vmatprep.mubr.msk.f32.mxu1 %vm5825_vm2, %v5824_v48  ;;  %5296 = vmatprep.subr.mxu1 %v5824_v48 }
 0x344   :  { %5264 = vmatpush3.msra.mxu0 %v5902_v27  ;;  %5271 = vmatprep.mubr.msk.f32.mxu0 %vm5825_vm2, %v5824_v48 }
 0x345   :  { %5265 = vmatprep.subr.mxu0 %v5824_v48 }
 0x346   :  { %5266 = vmatpush3.msra.mxu0 %v5905_v31 }
 0x347   :  { %5267 = vmatprep.subr.mxu0 %v5824_v48 }
 0x348   :  { %5268 = vmatpush3.msra.mxu0 %v5912_v36 }
 0x349   :  { %5269 = vmatprep.subr.mxu0 %v5824_v48 }
 0x34a   :  { %5270 = vmatpush3.msra.mxu0 %v5919_v38 }
 0x34b   :  { %5285 = vmatprep.subr.mxu0 %v5824_v48 }
 0x3e7   :  { %v1292_v16 = vpop.f32.mrf.mxu1 }
 0x3e9   :  { %v5218_v17 = vpop.f32.mrf.mxu1 }
 0x3ef   :  { %v1449_v18 = vpop.f32.mrf.mxu1 }
 0x3f0   :  { %v1201_v19 = vpop.f32.mrf.mxu0 }
 0x3f1   :  { %v5240_v20 = vpop.f32.mrf.mxu1  ;;  %v1293_v24 = vadd.f32 %v1292_v16, %v1201_v19 }
 0x3f2   :  { %v5207_v21 = vpop.f32.mrf.mxu0 }
 0x3f8   :  { %v1372_v22 = vpop.f32.mrf.mxu0 }
 0x3f9   :  { %v1607_v23 = vpop.f32.mrf.mxu1  ;;  %v1373_v28 = vadd.f32 %v1372_v22, %v1293_v24 }
 0x3fa   :  { %v5229_v25 = vpop.f32.mrf.mxu0 }
 0x3fb   :  { %v5262_v26 = vpop.f32.mrf.mxu1  ;;  %v1450_v29 = vadd.f32 %v1449_v18, %v1373_v28 }
 0x401   :  { %v1532_v30 = vpop.f32.mrf.mxu0 }
 0x402   :  { %v1533_v32 = vadd.f32 %v1532_v30, %v1450_v29 }
 0x403   :  { %v5251_v34 = vpop.f32.mrf.mxu0 }
 0x404   :  { %v1608_v35 = vadd.f32 %v1607_v23, %v1533_v32 }
 0x406   :  { %v1612_v44 = vrot.slane %v1608_v35, 6 }
 0x408   :  { %v1614_v45 = vadd.f32 %v1612_v44, %v6066_v40 }
 0x40a   :  { %v4818_v47 = vmul.f32 -1.442695, %v1614_v45 }
 0x40c   :  { %5677 = vpow2.f32 %v4818_v47 }
 0x40d   :  { %5679 = vtanh.f32 %v1614_v45 }
 0x419   :  { %v5678_v51 = vpop.eup %5677 }
 0x41a   :  { %v1618_v52 = vadd.f32 1.0, %v5678_v51  ;;  %v5680_v54 = vpop.eup %5679 }
 0x41c   :  { %5681 = vrcp.f32 %v1618_v52 }
 0x429   :  { %v5682_v55 = vpop.eup %5681 }
 0x42a   :  { %v1622_v59 = vsel %vm603_vm3, %v5682_v55, %v5680_v54 }
 0x42b   :  { %1628 = vrot.lane.b32.xlu1 %v1622_v59, %s5826_s3  ;;  %v1626_v63 = vmul.f32 %v1624_v62, %v1622_v59 }
 0x49d   :  { %v1629_v60 = vpop.permute.xlu1 %1628 }
 0x49e   :  { %v1631_v61 = vmul.f32 %v1629_v60, %v1622_v59 }
 0x4a0   :  { %1633 = vrot.lane.b32.xlu0 %v1631_v61, %s5826_s3 }
 0x512   :  { %v1634_v0 = vpop.permute.xlu0 %1633 }
 0x513   :  { %v6155_v1 = vadd.f32 %v1634_v0, %v1626_v63 }
 0x515   :  { %5683 = vtanh.f32 %v6155_v1  ;;  %v2147_v61 = vrot.slane %v6155_v1, 6 }
 0x522   :  { %v5684_v2 = vpop.eup %5683 }
 0x523   :  { %1639 = vrot.lane.b32.xlu1 %v5684_v2, %s5826_s3 }
 0x595   :  { %v1640_v3 = vpop.permute.xlu1 %1639 }
 0x596   :  { %v6159_v5 = vmul.f32 %v1640_v3, %v1622_v59 }
 0x598   :  { %v1644_v6 = vrot.slane %v6159_v5, 2 }
 0x59a   :  { %1645 = vrot.lane.b32.xlu0 %v1644_v6, %s5827_s5 }
 0x60c   :  { %v1646_v8 = vpop.permute.xlu0 %1645 }
 0x60d   :  { %v1647_v9 = vsel %vm604_vm1, %v1646_v8, 0  ;;  %v4778_v8 = vsel %vm4777_vm4, %v6084_v7, %v6159_v5 }
 0x60e   :  { %v1718_v4 = vand.u32 4294901760, %v1647_v9 }
 0x610   :  { %v1719_v11 = vsub.f32 %v1647_v9, %v1718_v4  ;;  %5283 = vmatmul.mubr.f32.vlgmr.msra.gmra.mxu1 %v1718_v4 }
 0x611   :  { %5297 = vmatpush3.msra.mxu1 %v5902_v27  ;;  %5304 = vmatprep.mubr.msk.f32.mxu1 %vm5825_vm2, %v5824_v48 }
 0x612   :  { %v1720_v12 = vand.u32 4294901760, %v1719_v11  ;;  %5298 = vmatprep.subr.mxu1 %v5824_v48 }
 0x613   :  { %5299 = vmatpush3.msra.mxu1 %v5905_v31 }
 0x614   :  { %v1721_v13 = vsub.f32 %v1719_v11, %v1720_v12  ;;  %5300 = vmatprep.subr.mxu1 %v5824_v48 }
 0x615   :  { %5301 = vmatpush3.msra.mxu1 %v5912_v36 }
 0x616   :  { %v1722_v14 = vand.u32 4294901760, %v1721_v13  ;;  %5302 = vmatprep.subr.mxu1 %v5824_v48 }
 0x617   :  { %5303 = vmatpush3.msra.mxu1 %v5919_v38 }
 0x618   :  { %5305 = vmatmul.mubr.f32.vlgmr.msra.gmra.mxu1 %v1720_v12  ;;  %5318 = vmatprep.subr.mxu1 %v5824_v48 }
 0x619   :  { %5272 = vmatmul.mubr.f32.vlgmr.msra.gmra.mxu0 %v1722_v14  ;;  %5319 = vmatpush3.msra.mxu1 %v5902_v27 }
 0x61a   :  { %5286 = vmatpush3.msra.mxu0 %v5908_v33  ;;  %5320 = vmatprep.subr.mxu1 %v5824_v48 }
 0x61b   :  { %5287 = vmatprep.subr.mxu0 %v5824_v48  ;;  %5321 = vmatpush3.msra.mxu1 %v5905_v31 }
 0x61c   :  { %5288 = vmatpush3.msra.mxu0 %v5916_v37  ;;  %5322 = vmatprep.subr.mxu1 %v5824_v48 }
 0x61d   :  { %5289 = vmatprep.subr.mxu0 %v5824_v48  ;;  %5323 = vmatpush3.msra.mxu1 %v5912_v36 }
 0x61e   :  { %5290 = vmatpush3.msra.mxu0 %v5929_v41  ;;  %5324 = vmatprep.subr.mxu1 %v5824_v48 }
 0x61f   :  { %5291 = vmatprep.subr.mxu0 %v5824_v48  ;;  %5293 = vmatprep.mubr.msk.f32.mxu0 %vm5825_vm2, %v5824_v48 }
 0x620   :  { %5292 = vmatpush3.msra.mxu0 %v5937_v43  ;;  %5325 = vmatpush3.msra.mxu1 %v5919_v38 }
 0x621   :  { %5326 = vmatprep.mubr.msk.f32.mxu1 %vm5825_vm2, %v5824_v48  ;;  %5294 = vmatmul.mubr.f32.vlgmr.msra.gmra.mxu0 %v1719_v11 }
 0x622   :  { %5307 = vmatprep.subr.mxu0 %v5824_v48  ;;  %5327 = vmatmul.mubr.f32.vlgmr.msra.gmra.mxu1 %v1718_v4 }
 0x623   :  { %5308 = vmatpush3.msra.mxu0 %v5923_v39  ;;  %5315 = vmatprep.mubr.msk.f32.mxu0 %vm5825_vm2, %v5824_v48 }
 0x624   :  { %5309 = vmatprep.subr.mxu0 %v5824_v48  ;;  %5340 = vmatprep.subr.mxu1 %v5824_v48 }
 0x625   :  { %5310 = vmatpush3.msra.mxu0 %v5933_v42  ;;  %5341 = vmatpush3.msra.mxu1 %v5957_v50 }
 0x626   :  { %5311 = vmatprep.subr.mxu0 %v5824_v48  ;;  %5342 = vmatprep.subr.mxu1 %v5824_v48 }
 0x627   :  { %5312 = vmatpush3.msra.mxu0 %v5944_v46  ;;  %5343 = vmatpush3.msra.mxu1 %v5968_v53 }
 0x628   :  { %5313 = vmatprep.subr.mxu0 %v5824_v48  ;;  %5344 = vmatprep.subr.mxu1 %v5824_v48 }
 0x629   :  { %5314 = vmatpush3.msra.mxu0 %v5953_v49  ;;  %5345 = vmatpush3.msra.mxu1 %v5978_v56 }
 0x62a   :  { %5316 = vmatmul.mubr.f32.vlgmr.msra.gmra.mxu0 %v1718_v4  ;;  %5346 = vmatprep.subr.mxu1 %v5824_v48 }
 0x62b   :  { %5347 = vmatpush3.msra.mxu1 %v5985_v57  ;;  %5329 = vmatprep.subr.mxu0 %v5824_v48 }
 0x62c   :  { %5348 = vmatprep.mubr.msk.f32.mxu1 %vm5825_vm2, %v5824_v48  ;;  %5362 = vmatprep.subr.mxu1 %v5824_v48 }
 0x62d   :  { %5330 = vmatpush3.msra.mxu0 %v5902_v27  ;;  %5337 = vmatprep.mubr.msk.f32.mxu0 %vm5825_vm2, %v5824_v48 }
 0x62e   :  { %5331 = vmatprep.subr.mxu0 %v5824_v48 }
 0x62f   :  { %5332 = vmatpush3.msra.mxu0 %v5905_v31 }
 0x630   :  { %5333 = vmatprep.subr.mxu0 %v5824_v48 }
 0x631   :  { %5334 = vmatpush3.msra.mxu0 %v5912_v36 }
 0x632   :  { %5335 = vmatprep.subr.mxu0 %v5824_v48 }
 0x633   :  { %5336 = vmatpush3.msra.mxu0 %v5919_v38 }
 0x634   :  { %5351 = vmatprep.subr.mxu0 %v5824_v48 }
 0x6d0   :  { %v1815_v15 = vpop.f32.mrf.mxu1 }
 0x6d2   :  { %v5284_v16 = vpop.f32.mrf.mxu1 }
 0x6d8   :  { %v1972_v17 = vpop.f32.mrf.mxu1 }
 0x6d9   :  { %v1724_v18 = vpop.f32.mrf.mxu0 }
 0x6da   :  { %v5306_v19 = vpop.f32.mrf.mxu1  ;;  %v1816_v23 = vadd.f32 %v1815_v15, %v1724_v18 }
 0x6db   :  { %v5273_v20 = vpop.f32.mrf.mxu0 }
 0x6e1   :  { %v1895_v21 = vpop.f32.mrf.mxu0 }
 0x6e2   :  { %v2130_v22 = vpop.f32.mrf.mxu1  ;;  %v1896_v26 = vadd.f32 %v1895_v21, %v1816_v23 }
 0x6e3   :  { %v5295_v24 = vpop.f32.mrf.mxu0 }
 0x6e4   :  { %v5328_v25 = vpop.f32.mrf.mxu1  ;;  %v1973_v28 = vadd.f32 %v1972_v17, %v1896_v26 }
 0x6ea   :  { %v2055_v29 = vpop.f32.mrf.mxu0 }
 0x6eb   :  { %v2056_v30 = vadd.f32 %v2055_v29, %v1973_v28 }
 0x6ec   :  { %v5317_v32 = vpop.f32.mrf.mxu0 }
 0x6ed   :  { %v2131_v34 = vadd.f32 %v2130_v22, %v2056_v30 }
 0x6ef   :  { %v2135_v35 = vrot.slane %v2131_v34, 4 }
 0x6f1   :  { %v2137_v44 = vadd.f32 %v2135_v35, %v6066_v40 }
 0x6f3   :  { %v4819_v45 = vmul.f32 -1.442695, %v2137_v44 }
 0x6f5   :  { %5685 = vpow2.f32 %v4819_v45 }
 0x6f6   :  { %5687 = vtanh.f32 %v2137_v44 }
 0x702   :  { %v5686_v47 = vpop.eup %5685 }
 0x703   :  { %v2141_v51 = vadd.f32 1.0, %v5686_v47  ;;  %v5688_v52 = vpop.eup %5687 }
 0x705   :  { %5689 = vrcp.f32 %v2141_v51 }
 0x712   :  { %v5690_v54 = vpop.eup %5689 }
 0x713   :  { %v2145_v55 = vsel %vm603_vm3, %v5690_v54, %v5688_v52 }
 0x714   :  { %2151 = vrot.lane.b32.xlu1 %v2145_v55, %s5826_s3  ;;  %v2149_v62 = vmul.f32 %v2147_v61, %v2145_v55 }
 0x786   :  { %v2152_v59 = vpop.permute.xlu1 %2151 }
 0x787   :  { %v2154_v60 = vmul.f32 %v2152_v59, %v2145_v55 }
 0x789   :  { %2156 = vrot.lane.b32.xlu0 %v2154_v60, %s5826_s3 }
 0x7fb   :  { %v2157_v63 = vpop.permute.xlu0 %2156 }
 0x7fc   :  { %v6230_v0 = vadd.f32 %v2157_v63, %v2149_v62 }
 0x7fe   :  { %5691 = vtanh.f32 %v6230_v0  ;;  %v2670_v61 = vrot.slane %v6230_v0, 6 }
 0x80b   :  { %v5692_v2 = vpop.eup %5691 }
 0x80c   :  { %2162 = vrot.lane.b32.xlu1 %v5692_v2, %s5826_s3 }
 0x87e   :  { %v2163_v3 = vpop.permute.xlu1 %2162 }
 0x87f   :  { %v2165_v6 = vmul.f32 %v2163_v3, %v2145_v55 }
 0x881   :  { %v2167_v9 = vrot.slane %v2165_v6, 4  ;;  %v6238_v1 = vsel %vm4779_vm5, %v4778_v8, %v2165_v6 }
 0x883   :  { %2168 = vrot.lane.b32.xlu0 %v2167_v9, %s5827_s5 }
 0x8f5   :  { %v2169_v4 = vpop.permute.xlu0 %2168 }
 0x8f6   :  { %v2170_v11 = vsel %vm604_vm1, %v2169_v4, 0 }
 0x8f7   :  { %v2241_v12 = vand.u32 4294901760, %v2170_v11 }
 0x8f9   :  { %v2242_v13 = vsub.f32 %v2170_v11, %v2241_v12  ;;  %5349 = vmatmul.mubr.f32.vlgmr.msra.gmra.mxu1 %v2241_v12 }
 0x8fa   :  { %5363 = vmatpush3.msra.mxu1 %v5902_v27  ;;  %5370 = vmatprep.mubr.msk.f32.mxu1 %vm5825_vm2, %v5824_v48 }
 0x8fb   :  { %v2243_v14 = vand.u32 4294901760, %v2242_v13  ;;  %5364 = vmatprep.subr.mxu1 %v5824_v48 }
 0x8fc   :  { %5365 = vmatpush3.msra.mxu1 %v5905_v31 }
 0x8fd   :  { %v2244_v7 = vsub.f32 %v2242_v13, %v2243_v14  ;;  %5366 = vmatprep.subr.mxu1 %v5824_v48 }
 0x8fe   :  { %5367 = vmatpush3.msra.mxu1 %v5912_v36 }
 0x8ff   :  { %v2245_v5 = vand.u32 4294901760, %v2244_v7  ;;  %5368 = vmatprep.subr.mxu1 %v5824_v48 }
 0x900   :  { %5369 = vmatpush3.msra.mxu1 %v5919_v38 }
 0x901   :  { %5371 = vmatmul.mubr.f32.vlgmr.msra.gmra.mxu1 %v2243_v14  ;;  %5384 = vmatprep.subr.mxu1 %v5824_v48 }
 0x902   :  { %5338 = vmatmul.mubr.f32.vlgmr.msra.gmra.mxu0 %v2245_v5  ;;  %5385 = vmatpush3.msra.mxu1 %v5902_v27 }
 0x903   :  { %5352 = vmatpush3.msra.mxu0 %v5908_v33  ;;  %5386 = vmatprep.subr.mxu1 %v5824_v48 }
 0x904   :  { %5353 = vmatprep.subr.mxu0 %v5824_v48  ;;  %5387 = vmatpush3.msra.mxu1 %v5905_v31 }
 0x905   :  { %5354 = vmatpush3.msra.mxu0 %v5916_v37  ;;  %5388 = vmatprep.subr.mxu1 %v5824_v48 }
 0x906   :  { %5355 = vmatprep.subr.mxu0 %v5824_v48  ;;  %5389 = vmatpush3.msra.mxu1 %v5912_v36 }
 0x907   :  { %5356 = vmatpush3.msra.mxu0 %v5929_v41  ;;  %5390 = vmatprep.subr.mxu1 %v5824_v48 }
 0x908   :  { %5357 = vmatprep.subr.mxu0 %v5824_v48  ;;  %5359 = vmatprep.mubr.msk.f32.mxu0 %vm5825_vm2, %v5824_v48 }
 0x909   :  { %5358 = vmatpush3.msra.mxu0 %v5937_v43  ;;  %5391 = vmatpush3.msra.mxu1 %v5919_v38 }
 0x90a   :  { %5392 = vmatprep.mubr.msk.f32.mxu1 %vm5825_vm2, %v5824_v48  ;;  %5360 = vmatmul.mubr.f32.vlgmr.msra.gmra.mxu0 %v2242_v13 }
 0x90b   :  { %5373 = vmatprep.subr.mxu0 %v5824_v48  ;;  %5393 = vmatmul.mubr.f32.vlgmr.msra.gmra.mxu1 %v2241_v12 }
 0x90c   :  { %5374 = vmatpush3.msra.mxu0 %v5923_v39  ;;  %5381 = vmatprep.mubr.msk.f32.mxu0 %vm5825_vm2, %v5824_v48 }
 0x90d   :  { %5375 = vmatprep.subr.mxu0 %v5824_v48  ;;  %5406 = vmatprep.subr.mxu1 %v5824_v48 }
 0x90e   :  { %5376 = vmatpush3.msra.mxu0 %v5933_v42  ;;  %5407 = vmatpush3.msra.mxu1 %v5957_v50 }
 0x90f   :  { %5377 = vmatprep.subr.mxu0 %v5824_v48  ;;  %5408 = vmatprep.subr.mxu1 %v5824_v48 }
 0x910   :  { %5378 = vmatpush3.msra.mxu0 %v5944_v46  ;;  %5409 = vmatpush3.msra.mxu1 %v5968_v53 }
 0x911   :  { %5379 = vmatprep.subr.mxu0 %v5824_v48  ;;  %5410 = vmatprep.subr.mxu1 %v5824_v48 }
 0x912   :  { %5380 = vmatpush3.msra.mxu0 %v5953_v49  ;;  %5411 = vmatpush3.msra.mxu1 %v5978_v56 }
 0x913   :  { %5382 = vmatmul.mubr.f32.vlgmr.msra.gmra.mxu0 %v2241_v12  ;;  %5412 = vmatprep.subr.mxu1 %v5824_v48 }
 0x914   :  { %5413 = vmatpush3.msra.mxu1 %v5985_v57  ;;  %5395 = vmatprep.subr.mxu0 %v5824_v48 }
 0x915   :  { %5414 = vmatprep.mubr.msk.f32.mxu1 %vm5825_vm2, %v5824_v48  ;;  %5428 = vmatprep.subr.mxu1 %v5824_v48 }
 0x916   :  { %5396 = vmatpush3.msra.mxu0 %v5902_v27  ;;  %5403 = vmatprep.mubr.msk.f32.mxu0 %vm5825_vm2, %v5824_v48 }
 0x917   :  { %5397 = vmatprep.subr.mxu0 %v5824_v48 }
 0x918   :  { %5398 = vmatpush3.msra.mxu0 %v5905_v31 }
 0x919   :  { %5399 = vmatprep.subr.mxu0 %v5824_v48 }
 0x91a   :  { %5400 = vmatpush3.msra.mxu0 %v5912_v36 }
 0x91b   :  { %5401 = vmatprep.subr.mxu0 %v5824_v48 }
 0x91c   :  { %5402 = vmatpush3.msra.mxu0 %v5919_v38 }
 0x91d   :  { %5417 = vmatprep.subr.mxu0 %v5824_v48 }
 0x9b9   :  { %v2338_v15 = vpop.f32.mrf.mxu1 }
 0x9bb   :  { %v5350_v16 = vpop.f32.mrf.mxu1 }
 0x9c1   :  { %v2495_v17 = vpop.f32.mrf.mxu1 }
 0x9c2   :  { %v2247_v18 = vpop.f32.mrf.mxu0 }
 0x9c3   :  { %v5372_v19 = vpop.f32.mrf.mxu1  ;;  %v2339_v23 = vadd.f32 %v2338_v15, %v2247_v18 }
 0x9c4   :  { %v5339_v20 = vpop.f32.mrf.mxu0 }
 0x9ca   :  { %v2418_v21 = vpop.f32.mrf.mxu0 }
 0x9cb   :  { %v2653_v22 = vpop.f32.mrf.mxu1  ;;  %v2419_v26 = vadd.f32 %v2418_v21, %v2339_v23 }
 0x9cc   :  { %v5361_v24 = vpop.f32.mrf.mxu0 }
 0x9cd   :  { %v5394_v25 = vpop.f32.mrf.mxu1  ;;  %v2496_v28 = vadd.f32 %v2495_v17, %v2419_v26 }
 0x9d3   :  { %v2578_v29 = vpop.f32.mrf.mxu0 }
 0x9d4   :  { %v2579_v30 = vadd.f32 %v2578_v29, %v2496_v28 }
 0x9d5   :  { %v5383_v32 = vpop.f32.mrf.mxu0 }
 0x9d6   :  { %v2654_v34 = vadd.f32 %v2653_v22, %v2579_v30 }
 0x9d8   :  { %v2658_v35 = vrot.slane %v2654_v34, 2 }
 0x9da   :  { %v2660_v44 = vadd.f32 %v2658_v35, %v6066_v40 }
 0x9dc   :  { %v4820_v45 = vmul.f32 -1.442695, %v2660_v44 }
 0x9de   :  { %5693 = vpow2.f32 %v4820_v45 }
 0x9df   :  { %5695 = vtanh.f32 %v2660_v44 }
 0x9eb   :  { %v5694_v47 = vpop.eup %5693 }
 0x9ec   :  { %v2664_v51 = vadd.f32 1.0, %v5694_v47  ;;  %v5696_v52 = vpop.eup %5695 }
 0x9ee   :  { %5697 = vrcp.f32 %v2664_v51 }
 0x9fb   :  { %v5698_v54 = vpop.eup %5697 }
 0x9fc   :  { %v2668_v55 = vsel %vm603_vm3, %v5698_v54, %v5696_v52 }
 0x9fd   :  { %2674 = vrot.lane.b32.xlu1 %v2668_v55, %s5826_s3  ;;  %v2672_v40 = vmul.f32 %v2670_v61, %v2668_v55 }
 0xa6f   :  { %v2675_v59 = vpop.permute.xlu1 %2674 }
 0xa70   :  { %v2677_v60 = vmul.f32 %v2675_v59, %v2668_v55 }
 0xa72   :  { %2679 = vrot.lane.b32.xlu0 %v2677_v60, %s5826_s3 }
 0xae4   :  { %v2680_v62 = vpop.permute.xlu0 %2679 }
 0xae5   :  { %v6308_v63 = vadd.f32 %v2680_v62, %v2672_v40 }
 0xae7   :  { %5699 = vtanh.f32 %v6308_v63 }
 0xaf4   :  { %v5700_v2 = vpop.eup %5699 }
 0xaf5   :  { %2685 = vrot.lane.b32.xlu1 %v5700_v2, %s5826_s3 }
 0xb67   :  { %v2686_v3 = vpop.permute.xlu1 %2685 }
 0xb68   :  { %v2688_v6 = vmul.f32 %v2686_v3, %v2668_v55  ;;  %v3190_v55 = vrot.slane %v6308_v63, 6 }
 0xb6a   :  { %v2690_v8 = vrot.slane %v2688_v6, 6  ;;  %v6314_v9 = vsel %vm4781_vm6, %v6238_v1, %v2688_v6 }
 0xb6c   :  { %2691 = vrot.lane.b32.xlu0 %v2690_v8, %s5827_s5 }
 0xbde   :  { %v2692_v0 = vpop.permute.xlu0 %2691 }
 0xbdf   :  { %v2693_v4 = vsel %vm604_vm1, %v2692_v0, 0 }
 0xbe0   :  { %v2764_v11 = vand.u32 4294901760, %v2693_v4 }
 0xbe2   :  { %v2765_v12 = vsub.f32 %v2693_v4, %v2764_v11  ;;  %5415 = vmatmul.mubr.f32.vlgmr.msra.gmra.mxu1 %v2764_v11 }
 0xbe3   :  { %5429 = vmatpush3.msra.mxu1 %v5902_v27  ;;  %5436 = vmatprep.mubr.msk.f32.mxu1 %vm5825_vm2, %v5824_v48 }
 0xbe4   :  { %v2766_v13 = vand.u32 4294901760, %v2765_v12  ;;  %5430 = vmatprep.subr.mxu1 %v5824_v48 }
 0xbe5   :  { %5431 = vmatpush3.msra.mxu1 %v5905_v31 }
 0xbe6   :  { %v2767_v1 = vsub.f32 %v2765_v12, %v2766_v13  ;;  %5432 = vmatprep.subr.mxu1 %v5824_v48 }
 0xbe7   :  { %5433 = vmatpush3.msra.mxu1 %v5912_v36 }
 0xbe8   :  { %v2768_v14 = vand.u32 4294901760, %v2767_v1  ;;  %5434 = vmatprep.subr.mxu1 %v5824_v48 }
 0xbe9   :  { %5435 = vmatpush3.msra.mxu1 %v5919_v38 }
 0xbea   :  { %5437 = vmatmul.mubr.f32.vlgmr.msra.gmra.mxu1 %v2766_v13  ;;  %5450 = vmatprep.subr.mxu1 %v5824_v48 }
 0xbeb   :  { %5404 = vmatmul.mubr.f32.vlgmr.msra.gmra.mxu0 %v2768_v14  ;;  %5451 = vmatpush3.msra.mxu1 %v5902_v27 }
 0xbec   :  { %5418 = vmatpush3.msra.mxu0 %v5908_v33  ;;  %5452 = vmatprep.subr.mxu1 %v5824_v48 }
 0xbed   :  { %5419 = vmatprep.subr.mxu0 %v5824_v48  ;;  %5453 = vmatpush3.msra.mxu1 %v5905_v31 }
 0xbee   :  { %5420 = vmatpush3.msra.mxu0 %v5916_v37  ;;  %5454 = vmatprep.subr.mxu1 %v5824_v48 }
 0xbef   :  { %5421 = vmatprep.subr.mxu0 %v5824_v48  ;;  %5455 = vmatpush3.msra.mxu1 %v5912_v36 }
 0xbf0   :  { %5422 = vmatpush3.msra.mxu0 %v5929_v41  ;;  %5456 = vmatprep.subr.mxu1 %v5824_v48 }
 0xbf1   :  { %5423 = vmatprep.subr.mxu0 %v5824_v48  ;;  %5425 = vmatprep.mubr.msk.f32.mxu0 %vm5825_vm2, %v5824_v48 }
 0xbf2   :  { %5424 = vmatpush3.msra.mxu0 %v5937_v43  ;;  %5457 = vmatpush3.msra.mxu1 %v5919_v38 }
 0xbf3   :  { %5458 = vmatprep.mubr.msk.f32.mxu1 %vm5825_vm2, %v5824_v48  ;;  %5426 = vmatmul.mubr.f32.vlgmr.msra.gmra.mxu0 %v2765_v12 }
 0xbf4   :  { %5439 = vmatprep.subr.mxu0 %v5824_v48  ;;  %5459 = vmatmul.mubr.f32.vlgmr.msra.gmra.mxu1 %v2764_v11 }
 0xbf5   :  { %5440 = vmatpush3.msra.mxu0 %v5923_v39  ;;  %5447 = vmatprep.mubr.msk.f32.mxu0 %vm5825_vm2, %v5824_v48 }
 0xbf6   :  { %5441 = vmatprep.subr.mxu0 %v5824_v48  ;;  %5472 = vmatprep.subr.mxu1 %v5824_v48 }
 0xbf7   :  { %5442 = vmatpush3.msra.mxu0 %v5933_v42  ;;  %5473 = vmatpush3.msra.mxu1 %v5957_v50 }
 0xbf8   :  { %5443 = vmatprep.subr.mxu0 %v5824_v48  ;;  %5474 = vmatprep.subr.mxu1 %v5824_v48 }
 0xbf9   :  { %5444 = vmatpush3.msra.mxu0 %v5944_v46  ;;  %5475 = vmatpush3.msra.mxu1 %v5968_v53 }
 0xbfa   :  { %5445 = vmatprep.subr.mxu0 %v5824_v48  ;;  %5476 = vmatprep.subr.mxu1 %v5824_v48 }
 0xbfb   :  { %5446 = vmatpush3.msra.mxu0 %v5953_v49  ;;  %5477 = vmatpush3.msra.mxu1 %v5978_v56 }
 0xbfc   :  { %5448 = vmatmul.mubr.f32.vlgmr.msra.gmra.mxu0 %v2764_v11  ;;  %5478 = vmatprep.subr.mxu1 %v5824_v48 }
 0xbfd   :  { %5479 = vmatpush3.msra.mxu1 %v5985_v57  ;;  %5461 = vmatprep.subr.mxu0 %v5824_v48 }
 0xbfe   :  { %5480 = vmatprep.mubr.msk.f32.mxu1 %vm5825_vm2, %v5824_v48  ;;  %5494 = vmatprep.subr.mxu1 %v5824_v48 }
 0xbff   :  { %5462 = vmatpush3.msra.mxu0 %v5902_v27  ;;  %5469 = vmatprep.mubr.msk.f32.mxu0 %vm5825_vm2, %v5824_v48 }
 0xc00   :  { %5463 = vmatprep.subr.mxu0 %v5824_v48 }
 0xc01   :  { %5464 = vmatpush3.msra.mxu0 %v5905_v31 }
 0xc02   :  { %5465 = vmatprep.subr.mxu0 %v5824_v48 }
 0xc03   :  { %5466 = vmatpush3.msra.mxu0 %v5912_v36 }
 0xc04   :  { %5467 = vmatprep.subr.mxu0 %v5824_v48 }
 0xc05   :  { %5468 = vmatpush3.msra.mxu0 %v5919_v38 }
 0xc06   :  { %5483 = vmatprep.subr.mxu0 %v5824_v48 }
 0xca2   :  { %v2861_v7 = vpop.f32.mrf.mxu1 }
 0xca4   :  { %v5416_v5 = vpop.f32.mrf.mxu1 }
 0xcaa   :  { %v3018_v15 = vpop.f32.mrf.mxu1 }
 0xcab   :  { %v2770_v16 = vpop.f32.mrf.mxu0 }
 0xcac   :  { %v5438_v17 = vpop.f32.mrf.mxu1  ;;  %v2862_v21 = vadd.f32 %v2861_v7, %v2770_v16 }
 0xcad   :  { %v5405_v18 = vpop.f32.mrf.mxu0 }
 0xcb3   :  { %v2941_v19 = vpop.f32.mrf.mxu0 }
 0xcb4   :  { %v3176_v20 = vpop.f32.mrf.mxu1  ;;  %v2942_v24 = vadd.f32 %v2941_v19, %v2862_v21 }
 0xcb5   :  { %v5427_v22 = vpop.f32.mrf.mxu0 }
 0xcb6   :  { %v5460_v23 = vpop.f32.mrf.mxu1  ;;  %v3019_v25 = vadd.f32 %v3018_v15, %v2942_v24 }
 0xcbc   :  { %v3101_v26 = vpop.f32.mrf.mxu0 }
 0xcbd   :  { %v3102_v28 = vadd.f32 %v3101_v26, %v3019_v25 }
 0xcbe   :  { %v5449_v29 = vpop.f32.mrf.mxu0 }
 0xcbf   :  { %v3177_v30 = vadd.f32 %v3176_v20, %v3102_v28 }
 0xcc1   :  { %v3180_v32 = vadd.f32 %v3177_v30, %v6064_v10 }
 0xcc3   :  { %v4821_v34 = vmul.f32 -1.442695, %v3180_v32 }
 0xcc5   :  { %5701 = vpow2.f32 %v4821_v34 }
 0xcc6   :  { %5703 = vtanh.f32 %v3180_v32 }
 0xcd2   :  { %v5702_v35 = vpop.eup %5701 }
 0xcd3   :  { %v3184_v44 = vadd.f32 1.0, %v5702_v35  ;;  %v5704_v45 = vpop.eup %5703 }
 0xcd5   :  { %5705 = vrcp.f32 %v3184_v44 }
 0xce2   :  { %v5706_v47 = vpop.eup %5705 }
 0xce3   :  { %v3188_v51 = vsel %vm603_vm3, %v5706_v47, %v5704_v45 }
 0xce4   :  { %3194 = vrot.lane.b32.xlu1 %v3188_v51, %s5826_s3  ;;  %v3192_v59 = vmul.f32 %v3190_v55, %v3188_v51 }
 0xd56   :  { %v3195_v52 = vpop.permute.xlu1 %3194 }
 0xd57   :  { %v3197_v54 = vmul.f32 %v3195_v52, %v3188_v51 }
 0xd59   :  { %3199 = vrot.lane.b32.xlu0 %v3197_v54, %s5826_s3 }
 0xdcb   :  { %v3200_v60 = vpop.permute.xlu0 %3199 }
 0xdcc   :  { %v6384_v61 = vadd.f32 %v3200_v60, %v3192_v59 }
 0xdce   :  { %5707 = vtanh.f32 %v6384_v61 }
 0xddb   :  { %v5708_v40 = vpop.eup %5707 }
 0xddc   :  { %3205 = vrot.lane.b32.xlu1 %v5708_v40, %s5826_s3 }
 0xe4e   :  { %v3206_v62 = vpop.permute.xlu1 %3205 }
 0xe4f   :  { %v6388_v2 = vmul.f32 %v3206_v62, %v3188_v51  ;;  %v3712_v51 = vrot.slane %v6384_v61, 6 }
 0xe51   :  { %3210 = vrot.lane.b32.xlu0 %v6388_v2, %s5827_s5 }
 0xec3   :  { %v3211_v3 = vpop.permute.xlu0 %3210 }
 0xec4   :  { %v3212_v6 = vsel %vm604_vm1, %v3211_v3, 0 }
 0xec5   :  { %v3283_v8 = vand.u32 4294901760, %v3212_v6 }
 0xec7   :  { %v3284_v63 = vsub.f32 %v3212_v6, %v3283_v8  ;;  %5481 = vmatmul.mubr.f32.vlgmr.msra.gmra.mxu1 %v3283_v8 }
 0xec8   :  { %5495 = vmatpush3.msra.mxu1 %v5902_v27  ;;  %5502 = vmatprep.mubr.msk.f32.mxu1 %vm5825_vm2, %v5824_v48 }
 0xec9   :  { %v3285_v0 = vand.u32 4294901760, %v3284_v63  ;;  %5496 = vmatprep.subr.mxu1 %v5824_v48 }
 0xeca   :  { %5497 = vmatpush3.msra.mxu1 %v5905_v31 }
 0xecb   :  { %v3286_v4 = vsub.f32 %v3284_v63, %v3285_v0  ;;  %5498 = vmatprep.subr.mxu1 %v5824_v48 }
 0xecc   :  { %5499 = vmatpush3.msra.mxu1 %v5912_v36 }
 0xecd   :  { %v3287_v11 = vand.u32 4294901760, %v3286_v4  ;;  %5500 = vmatprep.subr.mxu1 %v5824_v48 }
 0xece   :  { %5501 = vmatpush3.msra.mxu1 %v5919_v38 }
 0xecf   :  { %5503 = vmatmul.mubr.f32.vlgmr.msra.gmra.mxu1 %v3285_v0  ;;  %5516 = vmatprep.subr.mxu1 %v5824_v48 }
 0xed0   :  { %5470 = vmatmul.mubr.f32.vlgmr.msra.gmra.mxu0 %v3287_v11  ;;  %5517 = vmatpush3.msra.mxu1 %v5902_v27 }
 0xed1   :  { %5484 = vmatpush3.msra.mxu0 %v5908_v33  ;;  %5518 = vmatprep.subr.mxu1 %v5824_v48 }
 0xed2   :  { %5485 = vmatprep.subr.mxu0 %v5824_v48  ;;  %5519 = vmatpush3.msra.mxu1 %v5905_v31 }
 0xed3   :  { %5486 = vmatpush3.msra.mxu0 %v5916_v37  ;;  %5520 = vmatprep.subr.mxu1 %v5824_v48 }
 0xed4   :  { %5487 = vmatprep.subr.mxu0 %v5824_v48  ;;  %5521 = vmatpush3.msra.mxu1 %v5912_v36 }
 0xed5   :  { %5488 = vmatpush3.msra.mxu0 %v5929_v41  ;;  %5522 = vmatprep.subr.mxu1 %v5824_v48 }
 0xed6   :  { %5489 = vmatprep.subr.mxu0 %v5824_v48  ;;  %5491 = vmatprep.mubr.msk.f32.mxu0 %vm5825_vm2, %v5824_v48 }
 0xed7   :  { %5490 = vmatpush3.msra.mxu0 %v5937_v43  ;;  %5523 = vmatpush3.msra.mxu1 %v5919_v38 }
 0xed8   :  { %5524 = vmatprep.mubr.msk.f32.mxu1 %vm5825_vm2, %v5824_v48  ;;  %5492 = vmatmul.mubr.f32.vlgmr.msra.gmra.mxu0 %v3284_v63 }
 0xed9   :  { %5505 = vmatprep.subr.mxu0 %v5824_v48  ;;  %5525 = vmatmul.mubr.f32.vlgmr.msra.gmra.mxu1 %v3283_v8 }
 0xeda   :  { %5506 = vmatpush3.msra.mxu0 %v5923_v39  ;;  %5513 = vmatprep.mubr.msk.f32.mxu0 %vm5825_vm2, %v5824_v48 }
 0xedb   :  { %5507 = vmatprep.subr.mxu0 %v5824_v48  ;;  %5538 = vmatprep.subr.mxu1 %v5824_v48 }
 0xedc   :  { %5508 = vmatpush3.msra.mxu0 %v5933_v42  ;;  %5539 = vmatpush3.msra.mxu1 %v5957_v50 }
 0xedd   :  { %5509 = vmatprep.subr.mxu0 %v5824_v48  ;;  %5540 = vmatprep.subr.mxu1 %v5824_v48 }
 0xede   :  { %5510 = vmatpush3.msra.mxu0 %v5944_v46  ;;  %5541 = vmatpush3.msra.mxu1 %v5968_v53 }
 0xedf   :  { %5511 = vmatprep.subr.mxu0 %v5824_v48  ;;  %5542 = vmatprep.subr.mxu1 %v5824_v48 }
 0xee0   :  { %5512 = vmatpush3.msra.mxu0 %v5953_v49  ;;  %5543 = vmatpush3.msra.mxu1 %v5978_v56 }
 0xee1   :  { %5514 = vmatmul.mubr.f32.vlgmr.msra.gmra.mxu0 %v3283_v8  ;;  %5544 = vmatprep.subr.mxu1 %v5824_v48 }
 0xee2   :  { %5545 = vmatpush3.msra.mxu1 %v5985_v57  ;;  %5527 = vmatprep.subr.mxu0 %v5824_v48 }
 0xee3   :  { %5546 = vmatprep.mubr.msk.f32.mxu1 %vm5825_vm2, %v5824_v48  ;;  %5560 = vmatprep.subr.mxu1 %v5824_v48 }
 0xee4   :  { %5528 = vmatpush3.msra.mxu0 %v5902_v27  ;;  %5535 = vmatprep.mubr.msk.f32.mxu0 %vm5825_vm2, %v5824_v48 }
 0xee5   :  { %5529 = vmatprep.subr.mxu0 %v5824_v48 }
 0xee6   :  { %5530 = vmatpush3.msra.mxu0 %v5905_v31 }
 0xee7   :  { %5531 = vmatprep.subr.mxu0 %v5824_v48 }
 0xee8   :  { %5532 = vmatpush3.msra.mxu0 %v5912_v36 }
 0xee9   :  { %5533 = vmatprep.subr.mxu0 %v5824_v48 }
 0xeea   :  { %5534 = vmatpush3.msra.mxu0 %v5919_v38 }
 0xeeb   :  { %5549 = vmatprep.subr.mxu0 %v5824_v48 }
 0xf87   :  { %v3380_v12 = vpop.f32.mrf.mxu1 }
 0xf89   :  { %v5482_v13 = vpop.f32.mrf.mxu1 }
 0xf8f   :  { %v3537_v1 = vpop.f32.mrf.mxu1 }
 0xf90   :  { %v3289_v14 = vpop.f32.mrf.mxu0 }
 0xf91   :  { %v5504_v7 = vpop.f32.mrf.mxu1  ;;  %v3381_v17 = vadd.f32 %v3380_v12, %v3289_v14 }
 0xf92   :  { %v5471_v5 = vpop.f32.mrf.mxu0 }
 0xf98   :  { %v3460_v15 = vpop.f32.mrf.mxu0 }
 0xf99   :  { %v3695_v16 = vpop.f32.mrf.mxu1  ;;  %v3461_v20 = vadd.f32 %v3460_v15, %v3381_v17 }
 0xf9a   :  { %v5493_v18 = vpop.f32.mrf.mxu0 }
 0xf9b   :  { %v5526_v19 = vpop.f32.mrf.mxu1  ;;  %v3538_v21 = vadd.f32 %v3537_v1, %v3461_v20 }
 0xfa1   :  { %v3620_v22 = vpop.f32.mrf.mxu0 }
 0xfa2   :  { %v3621_v23 = vadd.f32 %v3620_v22, %v3538_v21 }
 0xfa3   :  { %v5515_v24 = vpop.f32.mrf.mxu0 }
 0xfa4   :  { %v3696_v25 = vadd.f32 %v3695_v16, %v3621_v23 }
 0xfa6   :  { %v3700_v26 = vrot.slane %v3696_v25, 6 }
 0xfa8   :  { %v3702_v28 = vadd.f32 %v3700_v26, %v6064_v10 }
 0xfaa   :  { %v4822_v29 = vmul.f32 -1.442695, %v3702_v28 }
 0xfac   :  { %5709 = vpow2.f32 %v4822_v29 }
 0xfad   :  { %5711 = vtanh.f32 %v3702_v28 }
 0xfb9   :  { %v5710_v30 = vpop.eup %5709 }
 0xfba   :  { %v3706_v32 = vadd.f32 1.0, %v5710_v30  ;;  %v5712_v34 = vpop.eup %5711 }
 0xfbc   :  { %5713 = vrcp.f32 %v3706_v32 }
 0xfc9   :  { %v5714_v35 = vpop.eup %5713 }
 0xfca   :  { %v3710_v44 = vsel %vm603_vm3, %v5714_v35, %v5712_v34 }
 0xfcb   :  { %3716 = vrot.lane.b32.xlu1 %v3710_v44, %s5826_s3  ;;  %v3714_v52 = vmul.f32 %v3712_v51, %v3710_v44 }
0x103d   :  { %v3717_v45 = vpop.permute.xlu1 %3716 }
0x103e   :  { %v3719_v47 = vmul.f32 %v3717_v45, %v3710_v44 }
0x1040   :  { %3721 = vrot.lane.b32.xlu0 %v3719_v47, %s5826_s3 }
0x10b2   :  { %v3722_v54 = vpop.permute.xlu0 %3721 }
0x10b3   :  { %v6459_v55 = vadd.f32 %v3722_v54, %v3714_v52 }
0x10b5   :  { %5715 = vtanh.f32 %v6459_v55  ;;  %v4235_v34 = vrot.slane %v6459_v55, 6 }
0x10c2   :  { %v5716_v59 = vpop.eup %5715 }
0x10c3   :  { %3727 = vrot.lane.b32.xlu1 %v5716_v59, %s5826_s3 }
0x1135   :  { %v3728_v60 = vpop.permute.xlu1 %3727 }
0x1136   :  { %v6463_v40 = vmul.f32 %v3728_v60, %v3710_v44 }
0x1138   :  { %v3732_v62 = vrot.slane %v6463_v40, 2  ;;  %v4783_v54 = vsel %vm4777_vm4, %v6388_v2, %v6463_v40 }
0x113a   :  { %3733 = vrot.lane.b32.xlu0 %v3732_v62, %s5827_s5 }
0x11ac   :  { %v3734_v3 = vpop.permute.xlu0 %3733 }
0x11ad   :  { %v3735_v6 = vsel %vm604_vm1, %v3734_v3, 0 }
0x11ae   :  { %v3806_v61 = vand.u32 4294901760, %v3735_v6 }
0x11b0   :  { %v3807_v8 = vsub.f32 %v3735_v6, %v3806_v61  ;;  %5547 = vmatmul.mubr.f32.vlgmr.msra.gmra.mxu1 %v3806_v61 }
0x11b1   :  { %5561 = vmatpush3.msra.mxu1 %v5902_v27  ;;  %5568 = vmatprep.mubr.msk.f32.mxu1 %vm5825_vm2, %v5824_v48 }
0x11b2   :  { %v3808_v63 = vand.u32 4294901760, %v3807_v8  ;;  %5562 = vmatprep.subr.mxu1 %v5824_v48 }
0x11b3   :  { %5563 = vmatpush3.msra.mxu1 %v5905_v31 }
0x11b4   :  { %v3809_v0 = vsub.f32 %v3807_v8, %v3808_v63  ;;  %5564 = vmatprep.subr.mxu1 %v5824_v48 }
0x11b5   :  { %5565 = vmatpush3.msra.mxu1 %v5912_v36 }
0x11b6   :  { %v3810_v4 = vand.u32 4294901760, %v3809_v0  ;;  %5566 = vmatprep.subr.mxu1 %v5824_v48 }
0x11b7   :  { %5567 = vmatpush3.msra.mxu1 %v5919_v38 }
0x11b8   :  { %5569 = vmatmul.mubr.f32.vlgmr.msra.gmra.mxu1 %v3808_v63  ;;  %5582 = vmatprep.subr.mxu1 %v5824_v48 }
0x11b9   :  { %5536 = vmatmul.mubr.f32.vlgmr.msra.gmra.mxu0 %v3810_v4  ;;  %5583 = vmatpush3.msra.mxu1 %v5902_v27 }
0x11ba   :  { %5550 = vmatpush3.msra.mxu0 %v5908_v33  ;;  %5584 = vmatprep.subr.mxu1 %v5824_v48 }
0x11bb   :  { %5551 = vmatprep.subr.mxu0 %v5824_v48  ;;  %5585 = vmatpush3.msra.mxu1 %v5905_v31 }
0x11bc   :  { %5552 = vmatpush3.msra.mxu0 %v5916_v37  ;;  %5586 = vmatprep.subr.mxu1 %v5824_v48 }
0x11bd   :  { %5553 = vmatprep.subr.mxu0 %v5824_v48  ;;  %5587 = vmatpush3.msra.mxu1 %v5912_v36 }
0x11be   :  { %5554 = vmatpush3.msra.mxu0 %v5929_v41  ;;  %5588 = vmatprep.subr.mxu1 %v5824_v48 }
0x11bf   :  { %5555 = vmatprep.subr.mxu0 %v5824_v48  ;;  %5557 = vmatprep.mubr.msk.f32.mxu0 %vm5825_vm2, %v5824_v48 }
0x11c0   :  { %5556 = vmatpush3.msra.mxu0 %v5937_v43  ;;  %5589 = vmatpush3.msra.mxu1 %v5919_v38 }
0x11c1   :  { %5590 = vmatprep.mubr.msk.f32.mxu1 %vm5825_vm2, %v5824_v48  ;;  %5558 = vmatmul.mubr.f32.vlgmr.msra.gmra.mxu0 %v3807_v8 }
0x11c2   :  { %5571 = vmatprep.subr.mxu0 %v5824_v48  ;;  %5591 = vmatmul.mubr.f32.vlgmr.msra.gmra.mxu1 %v3806_v61 }
0x11c3   :  { %5572 = vmatpush3.msra.mxu0 %v5923_v39  ;;  %5579 = vmatprep.mubr.msk.f32.mxu0 %vm5825_vm2, %v5824_v48 }
0x11c4   :  { %5573 = vmatprep.subr.mxu0 %v5824_v48  ;;  %5604 = vmatprep.subr.mxu1 %v5824_v48 }
0x11c5   :  { %5574 = vmatpush3.msra.mxu0 %v5933_v42  ;;  %5605 = vmatpush3.msra.mxu1 %v5957_v50 }
0x11c6   :  { %5575 = vmatprep.subr.mxu0 %v5824_v48  ;;  %5606 = vmatprep.subr.mxu1 %v5824_v48 }
0x11c7   :  { %5576 = vmatpush3.msra.mxu0 %v5944_v46  ;;  %5607 = vmatpush3.msra.mxu1 %v5968_v53 }
0x11c8   :  { %5577 = vmatprep.subr.mxu0 %v5824_v48  ;;  %5608 = vmatprep.subr.mxu1 %v5824_v48 }
0x11c9   :  { %5578 = vmatpush3.msra.mxu0 %v5953_v49  ;;  %5609 = vmatpush3.msra.mxu1 %v5978_v56 }
0x11ca   :  { %5580 = vmatmul.mubr.f32.vlgmr.msra.gmra.mxu0 %v3806_v61  ;;  %5610 = vmatprep.subr.mxu1 %v5824_v48 }
0x11cb   :  { %5611 = vmatpush3.msra.mxu1 %v5985_v57  ;;  %5593 = vmatprep.subr.mxu0 %v5824_v48 }
0x11cc   :  { %5612 = vmatprep.mubr.msk.f32.mxu1 %vm5825_vm2, %v5824_v48  ;;  %5626 = vmatprep.subr.mxu1 %v5824_v48 }
0x11cd   :  { %5594 = vmatpush3.msra.mxu0 %v5902_v27  ;;  %5601 = vmatprep.mubr.msk.f32.mxu0 %vm5825_vm2, %v5824_v48 }
0x11ce   :  { %5595 = vmatprep.subr.mxu0 %v5824_v48 }
0x11cf   :  { %5596 = vmatpush3.msra.mxu0 %v5905_v31 }
0x11d0   :  { %5597 = vmatprep.subr.mxu0 %v5824_v48 }
0x11d1   :  { %5598 = vmatpush3.msra.mxu0 %v5912_v36 }
0x11d2   :  { %5599 = vmatprep.subr.mxu0 %v5824_v48 }
0x11d3   :  { %5600 = vmatpush3.msra.mxu0 %v5919_v38 }
0x11d4   :  { %5615 = vmatprep.subr.mxu0 %v5824_v48 }
0x1270   :  { %v3903_v50 = vpop.f32.mrf.mxu1 }
0x1272   :  { %v5548_v53 = vpop.f32.mrf.mxu1 }
0x1278   :  { %v4060_v56 = vpop.f32.mrf.mxu1 }
0x1279   :  { %v3812_v57 = vpop.f32.mrf.mxu0 }
0x127a   :  { %v5570_v11 = vpop.f32.mrf.mxu1  ;;  %v3904_v14 = vadd.f32 %v3903_v50, %v3812_v57 }
0x127b   :  { %v5537_v12 = vpop.f32.mrf.mxu0 }
0x1281   :  { %v3983_v13 = vpop.f32.mrf.mxu0 }
0x1282   :  { %v4218_v1 = vpop.f32.mrf.mxu1  ;;  %v3984_v15 = vadd.f32 %v3983_v13, %v3904_v14 }
0x1283   :  { %v5559_v7 = vpop.f32.mrf.mxu0 }
0x1284   :  { %v5592_v5 = vpop.f32.mrf.mxu1  ;;  %v4061_v16 = vadd.f32 %v4060_v56, %v3984_v15 }
0x128a   :  { %v4143_v17 = vpop.f32.mrf.mxu0 }
0x128b   :  { %v4144_v18 = vadd.f32 %v4143_v17, %v4061_v16 }
0x128c   :  { %v5581_v19 = vpop.f32.mrf.mxu0 }
0x128d   :  { %v4219_v20 = vadd.f32 %v4218_v1, %v4144_v18 }
0x128f   :  { %v4223_v21 = vrot.slane %v4219_v20, 4 }
0x1291   :  { %v4225_v22 = vadd.f32 %v4223_v21, %v6064_v10 }
0x1293   :  { %v4823_v23 = vmul.f32 -1.442695, %v4225_v22 }
0x1295   :  { %5717 = vpow2.f32 %v4823_v23 }
0x1296   :  { %5719 = vtanh.f32 %v4225_v22 }
0x12a2   :  { %v5718_v24 = vpop.eup %5717 }
0x12a3   :  { %v4229_v25 = vadd.f32 1.0, %v5718_v24  ;;  %v5720_v26 = vpop.eup %5719 }
0x12a5   :  { %5721 = vrcp.f32 %v4229_v25 }
0x12b2   :  { %v5722_v28 = vpop.eup %5721 }
0x12b3   :  { %v4233_v29 = vsel %vm603_vm3, %v5722_v28, %v5720_v26 }
0x12b4   :  { %4239 = vrot.lane.b32.xlu1 %v4233_v29, %s5826_s3  ;;  %v4237_v35 = vmul.f32 %v4235_v34, %v4233_v29 }
0x1326   :  { %v4240_v30 = vpop.permute.xlu1 %4239 }
0x1327   :  { %v4242_v32 = vmul.f32 %v4240_v30, %v4233_v29 }
0x1329   :  { %4244 = vrot.lane.b32.xlu0 %v4242_v32, %s5826_s3 }
0x139b   :  { %v4245_v44 = vpop.permute.xlu0 %4244 }
0x139c   :  { %v6534_v45 = vadd.f32 %v4245_v44, %v4237_v35 }
0x139e   :  { %5723 = vtanh.f32 %v6534_v45 }
0x13ab   :  { %v5724_v47 = vpop.eup %5723 }
0x13ac   :  { %4250 = vrot.lane.b32.xlu1 %v5724_v47, %s5826_s3 }
0x141e   :  { %v4251_v51 = vpop.permute.xlu1 %4250 }
0x141f   :  { %v4253_v52 = vmul.f32 %v4251_v51, %v4233_v29 }
0x1421   :  { %v4255_v59 = vrot.slane %v4253_v52, 4  ;;  %v6542_v60 = vsel %vm4779_vm5, %v4783_v54, %v4253_v52 }
0x1423   :  { %4256 = vrot.lane.b32.xlu0 %v4255_v59, %s5827_s5 }
0x1495   :  { %v4257_v55 = vpop.permute.xlu0 %4256 }
0x1496   :  { %v4258_v62 = vsel %vm604_vm1, %v4257_v55, 0 }
0x1497   :  { %v4329_v3 = vand.u32 4294901760, %v4258_v62 }
0x1499   :  { %v4330_v6 = vsub.f32 %v4258_v62, %v4329_v3  ;;  %5613 = vmatmul.mubr.f32.vlgmr.msra.gmra.mxu1 %v4329_v3 }
0x149a   :  { %5627 = vmatpush3.msra.mxu1 %v5902_v27  ;;  %5634 = vmatprep.mubr.msk.f32.mxu1 %vm5825_vm2, %v5824_v48 }
0x149b   :  { %v4331_v61 = vand.u32 4294901760, %v4330_v6  ;;  %5628 = vmatprep.subr.mxu1 %v5824_v48 }
0x149c   :  { %5629 = vmatpush3.msra.mxu1 %v5905_v31 }
0x149d   :  { %v4332_v2 = vsub.f32 %v4330_v6, %v4331_v61  ;;  %5630 = vmatprep.subr.mxu1 %v5824_v48 }
0x149e   :  { %5631 = vmatpush3.msra.mxu1 %v5912_v36 }
0x149f   :  { %v4333_v40 = vand.u32 4294901760, %v4332_v2  ;;  %5632 = vmatprep.subr.mxu1 %v5824_v48 }
0x14a0   :  { %5633 = vmatpush3.msra.mxu1 %v5919_v38 }
0x14a1   :  { %5635 = vmatmul.mubr.f32.vlgmr.msra.gmra.mxu1 %v4331_v61  ;;  %5648 = vmatprep.subr.mxu1 %v5824_v48 }
0x14a2   :  { %5602 = vmatmul.mubr.f32.vlgmr.msra.gmra.mxu0 %v4333_v40  ;;  %5649 = vmatpush3.msra.mxu1 %v5902_v27 }
0x14a3   :  { %5616 = vmatpush3.msra.mxu0 %v5908_v33  ;;  %5650 = vmatprep.subr.mxu1 %v5824_v48 }
0x14a4   :  { %5617 = vmatprep.subr.mxu0 %v5824_v48  ;;  %5651 = vmatpush3.msra.mxu1 %v5905_v31 }
0x14a5   :  { %5618 = vmatpush3.msra.mxu0 %v5916_v37  ;;  %5652 = vmatprep.subr.mxu1 %v5824_v48 }
0x14a6   :  { %5619 = vmatprep.subr.mxu0 %v5824_v48  ;;  %5653 = vmatpush3.msra.mxu1 %v5912_v36 }
0x14a7   :  { %5620 = vmatpush3.msra.mxu0 %v5929_v41  ;;  %5654 = vmatprep.subr.mxu1 %v5824_v48 }
0x14a8   :  { %5621 = vmatprep.subr.mxu0 %v5824_v48  ;;  %5623 = vmatprep.mubr.msk.f32.mxu0 %vm5825_vm2, %v5824_v48 }
0x14a9   :  { %5622 = vmatpush3.msra.mxu0 %v5937_v43  ;;  %5655 = vmatpush3.msra.mxu1 %v5919_v38 }
0x14aa   :  { %5656 = vmatprep.mubr.msk.f32.mxu1 %vm5825_vm2, %v5824_v48  ;;  %5624 = vmatmul.mubr.f32.vlgmr.msra.gmra.mxu0 %v4330_v6 }
0x14ab   :  { %5637 = vmatprep.subr.mxu0 %v5824_v48  ;;  %5657 = vmatmul.mubr.f32.vlgmr.msra.gmra.mxu1 %v4329_v3 }
0x14ac   :  { %5638 = vmatpush3.msra.mxu0 %v5923_v39  ;;  %5645 = vmatprep.mubr.msk.f32.mxu0 %vm5825_vm2, %v5824_v48 }
0x14ad   :  { %5639 = vmatprep.subr.mxu0 %v5824_v48 }
0x14ae   :  { %5640 = vmatpush3.msra.mxu0 %v5933_v42 }
0x14af   :  { %5641 = vmatprep.subr.mxu0 %v5824_v48 }
0x14b0   :  { %5642 = vmatpush3.msra.mxu0 %v5944_v46 }
0x14b1   :  { %5643 = vmatprep.subr.mxu0 %v5824_v48 }
0x14b2   :  { %5644 = vmatpush3.msra.mxu0 %v5953_v49 }
0x14b3   :  { %5646 = vmatmul.mubr.f32.vlgmr.msra.gmra.mxu0 %v4329_v3 }
0x1559   :  { %v4426_v27 = vpop.f32.mrf.mxu1 }
0x155b   :  { %v5614_v31 = vpop.f32.mrf.mxu1 }
0x1561   :  { %v4583_v33 = vpop.f32.mrf.mxu1 }
0x1562   :  { %v4335_v36 = vpop.f32.mrf.mxu0 }
0x1563   :  { %v5636_v37 = vpop.f32.mrf.mxu1  ;;  %v4427_v43 = vadd.f32 %v4426_v27, %v4335_v36 }
0x1564   :  { %v5603_v38 = vpop.f32.mrf.mxu0 }
0x156a   :  { %v4506_v39 = vpop.f32.mrf.mxu0 }
0x156b   :  { %v4741_v41 = vpop.f32.mrf.mxu1  ;;  %v4507_v63 = vadd.f32 %v4506_v39, %v4427_v43 }
0x156c   :  { %v5625_v8 = vpop.f32.mrf.mxu0 }
0x156d   :  { %v5658_v42 = vpop.f32.mrf.mxu1  ;;  %v4584_v0 = vadd.f32 %v4583_v33, %v4507_v63 }
0x1573   :  { %v4666_v4 = vpop.f32.mrf.mxu0 }
0x1574   :  { %v4667_v46 = vadd.f32 %v4666_v4, %v4584_v0 }
0x1575   :  { %v5647_v50 = vpop.f32.mrf.mxu0 }
0x1576   :  { %v4742_v48 = vadd.f32 %v4741_v41, %v4667_v46 }
0x1578   :  { %v4746_v53 = vrot.slane %v4742_v48, 2 }
0x157a   :  { %v4748_v49 = vadd.f32 %v4746_v53, %v6064_v10  ;;  %v4758_v10 = vrot.slane %v6534_v45, 6 }
0x157c   :  { %v4824_v56 = vmul.f32 -1.442695, %v4748_v49 }
0x157e   :  { %5725 = vpow2.f32 %v4824_v56 }
0x157f   :  { %5727 = vtanh.f32 %v4748_v49 }
0x158b   :  { %v5726_v57 = vpop.eup %5725 }
0x158c   :  { %v4752_v11 = vadd.f32 1.0, %v5726_v57  ;;  %v5728_v12 = vpop.eup %5727 }
0x158e   :  { %5729 = vrcp.f32 %v4752_v11 }
0x159b   :  { %v5730_v13 = vpop.eup %5729 }
0x159c   :  { %v4756_v1 = vsel %vm603_vm3, %v5730_v13, %v5728_v12 }
0x159d   :  { %4762 = vrot.lane.b32.xlu1 %v4756_v1, %s5826_s3  ;;  %v4760_v5 = vmul.f32 %v4758_v10, %v4756_v1 }
0x160f   :  { %v4763_v14 = vpop.permute.xlu1 %4762 }
0x1610   :  { %v4765_v7 = vmul.f32 %v4763_v14, %v4756_v1 }
0x1612   :  { %4767 = vrot.lane.b32.xlu0 %v4765_v7, %s5826_s3 }
0x1616   :  { %4788 = vrot.lane.b32.xlu0 %v6314_v9, %s5827_s5 }
0x1684   :  { %v4768_v15 = vpop.permute.xlu0 %4767 }
0x1685   :  { %v4770_v16 = vadd.f32 %v4768_v15, %v4760_v5 }
0x1687   :  { %5731 = vtanh.f32 %v4770_v16 }
0x1688   :  { %v4789_v17 = vpop.permute.xlu0 %4788 }
0x1689   :  { %4794 = vst.msk [vmem:[#allocation8] sm:$0xff] %vm604_vm1, %v4789_v17 }
0x1694   :  { %v5732_v58 = vpop.eup %5731 }
0x1695   :  { %4773 = vrot.lane.b32.xlu1 %v5732_v58, %s5826_s3 }
0x1707   :  { %v4774_v18 = vpop.permute.xlu1 %4773 }
0x1708   :  { %v4776_v19 = vmul.f32 %v4774_v18, %v4756_v1 }
0x170a   :  { %v4785_v20 = vsel %vm4781_vm6, %v6542_v60, %v4776_v19 }
0x170b   :  { %4790 = vrot.lane.b32.xlu1 %v4785_v20, %s5827_s5 }
0x177d   :  { %v4791_v9 = vpop.permute.xlu1 %4790 }
0x177e   :  { %4795 = vst.msk [vmem:[#allocation8 + $0x8] sm:$0xff] %vm604_vm1, %v4791_v9 }
0x177f   :  { %5804 = shalt.err (!%p5801_p5)
}
0x1780   :  { %4807 = dma.vmem_to_hbm [thread:$0]  %s4802_s17, 256, %s6610_s6, [#allocation4], %s5821_s26, %s5821_s26, %s5822_s27  }
0x1781   :  { %5817 = dma.done.wait [#allocation4], 256  }
0x1782   :  { %5818 = vsyncadd [#allocation4], 4294967040 }
0x1783   :  { %4811 = vsyncpa [#allocation3], 1 }
0x1784   :  { %4812 = vsyncpa [#allocation6], 1 }
0x1785   :  { %4813 = vsyncpa [#allocation4], 1 }

</bundles_post_ra>
